<compile_context>
chip_gen: v7x
topology: tpu7x:2x2x1
jax: 0.10.0
libtpu: 0.0.40
codegen_flags: <defaults>
</compile_context>

<pallas_src>
import math

import jax
import jax.numpy as jnp
from jax.experimental import pallas as pl
from jax.experimental.pallas import tpu as pltpu

EPS = 1e-5            # torch.nn.LayerNorm default eps
NEG_INF = -1e30       # finite mask bias (avoids -inf - -inf = NaN under tiling)

_VMEM_LIMIT_CACHE = None


def _vmem_limit_bytes():
    """Generation-aware scoped-VMEM limit: ~75% of physical, capped at 100 MiB."""
    global _VMEM_LIMIT_CACHE
    if _VMEM_LIMIT_CACHE is None:
        cap = None
        try:
            get_info = getattr(pltpu, "get_tpu_info", None)
            if get_info is not None:
                cap = getattr(get_info(), "vmem_capacity_bytes", None)
        except Exception:
            cap = None
        if not cap:
            cap = 64 * 1024 * 1024            # conservative fallback (v7x size)
        _VMEM_LIMIT_CACHE = int(min(cap * 3 // 4, 100 * 1024 * 1024))
    return _VMEM_LIMIT_CACHE


def _compiler_params(dimension_semantics):
    return pltpu.CompilerParams(dimension_semantics=dimension_semantics,
                                vmem_limit_bytes=_vmem_limit_bytes())


# ---------------------------------------------------------------------------
# Small helpers
# ---------------------------------------------------------------------------
def _pad_to(n, mult):
    return ((n + mult - 1) // mult) * mult


def _pick_tile(n, target, mult):
    """Largest tile <= target that divides n and is a multiple of `mult`
    (falls back to the full dim, which is always a legal block)."""
    if n <= target:
        return n
    t = (target // mult) * mult
    while t >= mult:
        if n % t == 0:
            return t
        t -= mult
    return n


def _layer_norm(x, w, b):
    # x: [tt, E] (f32); w, b: [1, E]
    x = x.astype(jnp.float32)
    mean = jnp.mean(x, axis=-1, keepdims=True)
    var = jnp.mean((x - mean) ** 2, axis=-1, keepdims=True)
    return (x - mean) * jax.lax.rsqrt(var + EPS) * w + b


def _gelu_tanh(x):
    # Matches nn.GELU(approximate='tanh'); computed in f32.
    c = math.sqrt(2.0 / math.pi)
    return 0.5 * x * (1.0 + jnp.tanh(c * (x + 0.044715 * x * x * x)))


# ---------------------------------------------------------------------------
# Pallas kernels
# ---------------------------------------------------------------------------
def ln_qkv_kernel(x_ref, ln1w_ref, ln1b_ref, wqkv_ref, bqkv_ref, qkv_ref):
    """LN1(x) -> packed qkv projection (bf16 MXU, f32 accumulate).
    The 1/sqrt(H) attention scale is folded into Wq/bq at init."""
    h = _layer_norm(x_ref[...], ln1w_ref[...], ln1b_ref[...])
    qkv = jnp.dot(h.astype(jnp.bfloat16), wqkv_ref[...],
                  preferred_element_type=jnp.float32) + bqkv_ref[...]
    qkv_ref[...] = qkv.astype(qkv_ref.dtype)


def flash_attn_kernel(q_ref, k_ref, v_ref, o_ref, m_scr, l_scr, acc_scr):
    """Causal flash attention. grid = (head_batch, q_tiles, kv_tiles).
    Fully-masked KV tiles are skipped; the causal bias is only applied on
    diagonal-crossing tiles."""
    qi = pl.program_id(1)
    ki = pl.program_id(2)
    tQ = q_ref.shape[1]
    tK = k_ref.shape[1]

    @pl.when(ki == 0)
    def _init():
        m_scr[...] = jnp.full(m_scr.shape, NEG_INF, m_scr.dtype)
        l_scr[...] = jnp.zeros(l_scr.shape, l_scr.dtype)
        acc_scr[...] = jnp.zeros(acc_scr.shape, acc_scr.dtype)

    # Tile classification from program ids (scalar work only).
    run = (qi * tQ + tQ - 1) >= (ki * tK)          # some (q, k) pair unmasked
    needs_mask = (ki * tK + tK - 1) > (qi * tQ)    # tile crosses the diagonal

    def _update(masked):
        q = q_ref[...]                             # [bh, tQ, H] bf16
        k = k_ref[...]
        v = v_ref[...]
        s = jnp.einsum('bqd,bkd->bqk', q, k,
                       preferred_element_type=jnp.float32)
        if masked:
            q_pos = qi * tQ + jax.lax.broadcasted_iota(jnp.int32, (tQ, tK), 0)
            k_pos = ki * tK + jax.lax.broadcasted_iota(jnp.int32, (tQ, tK), 1)
            s = jnp.where((q_pos >= k_pos)[None, :, :], s, NEG_INF)
        m_prev = m_scr[...]
        m_new = jnp.maximum(m_prev, jnp.max(s, axis=-1, keepdims=True))
        alpha = jnp.exp(m_prev - m_new)
        p = jnp.exp(s - m_new)
        l_scr[...] = alpha * l_scr[...] + jnp.sum(p, axis=-1, keepdims=True)
        acc_scr[...] = alpha * acc_scr[...] + jnp.einsum(
            'bqk,bkd->bqd', p.astype(v.dtype), v,
            preferred_element_type=jnp.float32)
        m_scr[...] = m_new

    @pl.when(jnp.logical_and(run, needs_mask))
    def _diag_tile():
        _update(True)

    @pl.when(jnp.logical_and(run, jnp.logical_not(needs_mask)))
    def _full_tile():
        _update(False)

    @pl.when(ki == pl.num_programs(2) - 1)
    def _finish():
        inv_l = pl.reciprocal(l_scr[...], approx=True)
        o_ref[...] = (acc_scr[...] * inv_l).astype(o_ref.dtype)


def proj_mlp_kernel(x_ref, attn_ref, wo_ref, bo_ref, ln2w_ref, ln2b_ref,
                    w1_ref, b1_ref, w2_ref, b2_ref, out_ref,
                    x1_scr, h_scr, acc_scr):
    """Residual update with the MLP hidden dim tiled on a reduction axis:
       x1 = x + attn@Wo + bo                                (f axis == 0)
       out = x1 + sum_f GELU(LN2(x1) @ W1[:, f]) @ W2[f, :] + b2
    grid = (token_tiles, F_tiles)."""
    fi = pl.program_id(1)

    @pl.when(fi == 0)
    def _head():
        proj = jnp.dot(attn_ref[...], wo_ref[...],
                       preferred_element_type=jnp.float32) + bo_ref[...]
        x1 = x_ref[...] + proj
        x1_scr[...] = x1
        h_scr[...] = _layer_norm(x1, ln2w_ref[...], ln2b_ref[...]).astype(
            h_scr.dtype)
        acc_scr[...] = jnp.zeros(acc_scr.shape, acc_scr.dtype)

    ff = jnp.dot(h_scr[...], w1_ref[...],
                 preferred_element_type=jnp.float32) + b1_ref[...]
    ff = _gelu_tanh(ff)
    acc_scr[...] += jnp.dot(ff.astype(jnp.bfloat16), w2_ref[...],
                            preferred_element_type=jnp.float32)

    @pl.when(fi == pl.num_programs(1) - 1)
    def _tail():
        out_ref[...] = (x1_scr[...] + acc_scr[...] + b2_ref[...]).astype(
            out_ref.dtype)


def final_ln_kernel(x_ref, w_ref, b_ref, o_ref):
    o_ref[...] = _layer_norm(x_ref[...], w_ref[...], b_ref[...]).astype(
        o_ref.dtype)


def lm_head_kernel(x_ref, w_ref, o_ref):
    o_ref[...] = jnp.dot(x_ref[...], w_ref[...],
                         preferred_element_type=jnp.float32).astype(o_ref.dtype)


# ---------------------------------------------------------------------------
# pallas_call wrappers (grids + BlockSpecs)
# ---------------------------------------------------------------------------
def _ln_qkv(x, ln1w, ln1b, wqkv, bqkv, tt):
    T, E = x.shape
    E3 = wqkv.shape[1]
    gs = pltpu.PrefetchScalarGridSpec(
        num_scalar_prefetch=0,
        grid=(T // tt,),
        in_specs=[
            pl.BlockSpec((tt, E), lambda i: (i, 0)),
            pl.BlockSpec(ln1w.shape, lambda i: (0, 0)),
            pl.BlockSpec(ln1b.shape, lambda i: (0, 0)),
            pl.BlockSpec(wqkv.shape, lambda i: (0, 0)),
            pl.BlockSpec(bqkv.shape, lambda i: (0, 0)),
        ],
        out_specs=pl.BlockSpec((tt, E3), lambda i: (i, 0)),
    )
    return pl.pallas_call(
        ln_qkv_kernel, grid_spec=gs,
        out_shape=jax.ShapeDtypeStruct((T, E3), jnp.bfloat16),
        compiler_params=_compiler_params(("parallel",)),
    )(x, ln1w, ln1b, wqkv, bqkv)


def _flash_attention(qh, kh, vh, ta):
    BH, Sp, H = qh.shape
    bh_t = _pick_tile(BH, 8, 1)
    grid = (BH // bh_t, Sp // ta, Sp // ta)
    q_spec = pl.BlockSpec((bh_t, ta, H), lambda b, i, j: (b, i, 0))
    kv_spec = pl.BlockSpec((bh_t, ta, H), lambda b, i, j: (b, j, 0))
    gs = pltpu.PrefetchScalarGridSpec(
        num_scalar_prefetch=0,
        grid=grid,
        in_specs=[q_spec, kv_spec, kv_spec],
        out_specs=q_spec,
        scratch_shapes=[
            pltpu.VMEM((bh_t, ta, 1), jnp.float32),   # running max
            pltpu.VMEM((bh_t, ta, 1), jnp.float32),   # running denom
            pltpu.VMEM((bh_t, ta, H), jnp.float32),   # output accumulator
        ],
    )
    return pl.pallas_call(
        flash_attn_kernel, grid_spec=gs,
        out_shape=jax.ShapeDtypeStruct((BH, Sp, H), jnp.bfloat16),
        compiler_params=_compiler_params(("parallel", "parallel", "arbitrary")),
    )(qh, kh, vh)


def _proj_mlp(x, attn, wo, bo, ln2w, ln2b, w1, b1, w2, b2, tt, tf):
    T, E = x.shape
    F = w1.shape[1]
    gs = pltpu.PrefetchScalarGridSpec(
        num_scalar_prefetch=0,
        grid=(T // tt, F // tf),
        in_specs=[
            pl.BlockSpec((tt, E), lambda i, f: (i, 0)),      # x (residual, f32)
            pl.BlockSpec((tt, E), lambda i, f: (i, 0)),      # merged attn (bf16)
            pl.BlockSpec(wo.shape, lambda i, f: (0, 0)),
            pl.BlockSpec(bo.shape, lambda i, f: (0, 0)),
            pl.BlockSpec(ln2w.shape, lambda i, f: (0, 0)),
            pl.BlockSpec(ln2b.shape, lambda i, f: (0, 0)),
            pl.BlockSpec((E, tf), lambda i, f: (0, f)),      # w1 tile
            pl.BlockSpec((1, tf), lambda i, f: (0, f)),      # b1 tile
            pl.BlockSpec((tf, E), lambda i, f: (f, 0)),      # w2 tile
            pl.BlockSpec(b2.shape, lambda i, f: (0, 0)),
        ],
        out_specs=pl.BlockSpec((tt, E), lambda i, f: (i, 0)),
        scratch_shapes=[
            pltpu.VMEM((tt, E), jnp.float32),    # x1 (post-attention residual)
            pltpu.VMEM((tt, E), jnp.bfloat16),   # LN2(x1)
            pltpu.VMEM((tt, E), jnp.float32),    # c_proj accumulator
        ],
    )
    return pl.pallas_call(
        proj_mlp_kernel, grid_spec=gs,
        out_shape=jax.ShapeDtypeStruct((T, E), jnp.float32),
        input_output_aliases={0: 0},    # update residual stream in place
        compiler_params=_compiler_params(("parallel", "arbitrary")),
    )(x, attn, wo, bo, ln2w, ln2b, w1, b1, w2, b2)


def _final_ln(x, lnw, lnb, tt):
    T, E = x.shape
    gs = pltpu.PrefetchScalarGridSpec(
        num_scalar_prefetch=0,
        grid=(T // tt,),
        in_specs=[pl.BlockSpec((tt, E), lambda i: (i, 0)),
                  pl.BlockSpec(lnw.shape, lambda i: (0, 0)),
                  pl.BlockSpec(lnb.shape, lambda i: (0, 0))],
        out_specs=pl.BlockSpec((tt, E), lambda i: (i, 0)),
    )
    return pl.pallas_call(
        final_ln_kernel, grid_spec=gs,
        out_shape=jax.ShapeDtypeStruct((T, E), jnp.bfloat16),
        compiler_params=_compiler_params(("parallel",)),
    )(x, lnw, lnb)


def _lm_head(xn, w_lm, tt, tv):
    T, E = xn.shape
    Vp = w_lm.shape[1]
    # Vocab is the OUTER grid axis: the large LM-head weight streams through
    # HBM exactly once; only the (much smaller) activation is re-streamed.
    gs = pltpu.PrefetchScalarGridSpec(
        num_scalar_prefetch=0,
        grid=(Vp // tv, T // tt),
        in_specs=[pl.BlockSpec((tt, E), lambda vj, i: (i, 0)),
                  pl.BlockSpec((E, tv), lambda vj, i: (0, vj))],
        out_specs=pl.BlockSpec((tt, tv), lambda vj, i: (i, vj)),
    )
    return pl.pallas_call(
        lm_head_kernel, grid_spec=gs,
        out_shape=jax.ShapeDtypeStruct((T, Vp), jnp.bfloat16),
        compiler_params=_compiler_params(("parallel", "parallel")),
    )(xn, w_lm)


# ---------------------------------------------------------------------------
# Parameters (deterministic synthetic init) and full forward pass
# ---------------------------------------------------------------------------
def _pad_vocab(v):
    # Large vocabs: pad to the vocab tile (2048) so the LM-head grid divides
    # evenly and stores stay lane-dense; small vocabs: pad to 128 lanes.
    return _pad_to(v, 2048) if v >= 2048 else _pad_to(v, 128)


def init_params(key, *, vocab_size, seq_len, embedding_size, num_heads,
                num_blocks, ff_factor):
    E = embedding_size
    F = E * ff_factor
    H = E // num_heads
    scale = H ** (-0.5)
    Vp = _pad_vocab(vocab_size)

    def normal(k, shape, s=0.02):
        return (s * jax.random.normal(k, shape)).astype(jnp.float32)

    keys = jax.random.split(key, 3 + num_blocks)
    w_lm = normal(keys[2], (E, vocab_size))
    w_lm = jnp.pad(w_lm, ((0, 0), (0, Vp - vocab_size)))

    params = {
        'wte': normal(keys[0], (vocab_size, E)),
        'wpe': normal(keys[1], (seq_len, E)),
        'ln_f_w': jnp.ones((1, E), jnp.float32),
        'ln_f_b': jnp.zeros((1, E), jnp.float32),
        'w_lm': w_lm.astype(jnp.bfloat16),
        'blocks': [],
    }
    for i in range(num_blocks):
        bk = jax.random.split(keys[3 + i], 5)
        wqkv = normal(bk[0], (E, 3 * E))
        bqkv = normal(bk[1], (1, 3 * E))
        # Fold the attention 1/sqrt(H) scale into the query projection so the
        # flash-attention inner loop never multiplies by it.
        wqkv = wqkv.at[:, :E].multiply(scale)
        bqkv = bqkv.at[:, :E].multiply(scale)
        blk = (
            jnp.ones((1, E), jnp.float32),                   # ln1_w
            jnp.zeros((1, E), jnp.float32),                  # ln1_b
            wqkv.astype(jnp.bfloat16),                       # wqkv (packed)
            bqkv,                                            # bqkv (f32)
            normal(bk[2], (E, E)).astype(jnp.bfloat16),      # wo (attn proj)
            jnp.zeros((1, E), jnp.float32),                  # bo
            jnp.ones((1, E), jnp.float32),                   # ln2_w
            jnp.zeros((1, E), jnp.float32),                  # ln2_b
            normal(bk[3], (E, F)).astype(jnp.bfloat16),      # w1 (mlp c_fc)
            jnp.zeros((1, F), jnp.float32),                  # b1
            normal(bk[4], (F, E)).astype(jnp.bfloat16),      # w2 (mlp c_proj)
            jnp.zeros((1, E), jnp.float32),                  # b2
        )
        params['blocks'].append(blk)
    return params


def gpt2_forward(indices, params, num_heads, vocab_size):
    """indices: [B, S] int32 -> logits [B, S, V] (bf16)."""
    B, S = indices.shape
    E = params['wte'].shape[1]
    nh = num_heads
    H = E // nh

    tok = jnp.take(params['wte'], indices, axis=0)      # [B, S, E] (gather)
    pos = params['wpe'][:S][None, :, :]                 # [1, S, E]
    x = (tok + pos).astype(jnp.float32)                 # dropout = id (eval)

    # Pad the sequence so every tile is a multiple of 16 (bf16 sublane packing)
    # and long sequences land on 256-aligned tiles.
    S_pad = _pad_to(S, 16)
    if S_pad > 512:
        S_pad = _pad_to(S_pad, 256)
    if S_pad != S:
        x = jnp.pad(x, ((0, 0), (0, S_pad - S), (0, 0)))
    T = B * S_pad
    x2 = x.reshape(T, E)                                 # token-major residual

    tt = _pick_tile(T, 512, 16)          # token tile for per-token kernels
    ta = _pick_tile(S_pad, 512, 16)      # attention q/kv tile
    F = params['blocks'][0][8].shape[1]
    tf = _pick_tile(F, 1024, 128)        # FFN hidden reduction tile

    for blk in params['blocks']:
        (ln1w, ln1b, wqkv, bqkv, wo, bo,
         ln2w, ln2b, w1, b1, w2, b2) = blk
        qkv = _ln_qkv(x2, ln1w, ln1b, wqkv, bqkv, tt)    # [T, 3E] bf16 packed
        # Head split (single fused JAX transpose to the canonical flash layout)
        qkv = qkv.reshape(B, S_pad, 3, nh, H).transpose(2, 0, 3, 1, 4)
        qkv = qkv.reshape(3, B * nh, S_pad, H)
        attn_h = _flash_attention(qkv[0], qkv[1], qkv[2], ta)  # [B*nh, S, H]
        attn = attn_h.reshape(B, nh, S_pad, H).transpose(0, 2, 1, 3)
        attn = attn.reshape(T, E)                        # merged heads, bf16
        x2 = _proj_mlp(x2, attn, wo, bo, ln2w, ln2b, w1, b1, w2, b2, tt, tf)

    xn = _final_ln(x2, params['ln_f_w'], params['ln_f_b'], tt)   # [T, E] bf16
    Vp = params['w_lm'].shape[1]
    tv = Vp if Vp <= 2048 else 2048
    logits = _lm_head(xn, params['w_lm'], tt, tv)                # [T, Vp] bf16
    logits = logits.reshape(B, S_pad, Vp)
    if S_pad != S or Vp != vocab_size:
        logits = logits[:, :S, :vocab_size]
    return logits


# TODO(synk): generate() (multinomial sampling loop) and the per-head
# frozen-output capture/replay hooks are host-side control flow with no clean
# kernel equivalent; only the eval-mode forward pass is implemented here.
if __name__ == "__main__":
    # Small config consistent with ModelConfig: E % num_heads == 0.
    B, S = 2, 8
    EMBED, NUM_HEADS, NUM_BLOCKS = 32, 4, 2
    VOCAB, SEQ_LEN, FF_FACTOR = 128, 16, 4

    key = jax.random.PRNGKey(0)
    k_params, k_idx = jax.random.split(key)
    params = init_params(k_params, vocab_size=VOCAB, seq_len=SEQ_LEN,
                         embedding_size=EMBED, num_heads=NUM_HEADS,
                         num_blocks=NUM_BLOCKS, ff_factor=FF_FACTOR)
    indices = jax.random.randint(k_idx, (B, S), 0, VOCAB, dtype=jnp.int32)

    fwd = jax.jit(gpt2_forward, static_argnums=(2, 3))
    logits = jax.block_until_ready(fwd(indices, params, NUM_HEADS, VOCAB))

    assert logits.shape == (B, S, VOCAB), logits.shape
    assert logits.dtype == jnp.bfloat16, logits.dtype
    assert bool(jnp.all(jnp.isfinite(logits.astype(jnp.float32))))
    print("KERNEL_OK")
</pallas_src>

<mosaic_0001>
module attributes {stable_mosaic.version = 11 : i64} {
  func.func @ln_qkv_kernel(%arg0: i32, %arg1: memref<32x32xf32, #tpu.memory_space<vmem>>, %arg2: memref<1x32xf32, #tpu.memory_space<vmem>>, %arg3: memref<1x32xf32, #tpu.memory_space<vmem>>, %arg4: memref<32x96xbf16, #tpu.memory_space<vmem>>, %arg5: memref<1x96xf32, #tpu.memory_space<vmem>>, %arg6: memref<32x96xbf16, #tpu.memory_space<vmem>>) attributes {dimension_semantics = [#tpu.dimension_semantics<parallel>], iteration_bounds = array<i64: 1>, scalar_prefetch = 0 : i64, scratch_operands = 0 : i64, tpu.core_type = #tpu.core_type<tc>, window_params = [{transform_indices = @transform_0, window_bounds = array<i64: 32, 32>}, {pipeline_mode = #tpu.pipeline_mode<synchronous>, transform_indices = @transform_1, window_bounds = array<i64: 1, 32>}, {pipeline_mode = #tpu.pipeline_mode<synchronous>, transform_indices = @transform_2, window_bounds = array<i64: 1, 32>}, {pipeline_mode = #tpu.pipeline_mode<synchronous>, transform_indices = @transform_3, window_bounds = array<i64: 32, 96>}, {pipeline_mode = #tpu.pipeline_mode<synchronous>, transform_indices = @transform_4, window_bounds = array<i64: 1, 96>}, {transform_indices = @transform_5, window_bounds = array<i64: 32, 96>}]} {
    %c0 = arith.constant 0 : index
    %c0_0 = arith.constant 0 : index
    %0 = vector.load %arg1[%c0, %c0_0] : memref<32x32xf32, #tpu.memory_space<vmem>>, vector<32x32xf32>
    %c0_1 = arith.constant 0 : index
    %c0_2 = arith.constant 0 : index
    %1 = vector.load %arg2[%c0_1, %c0_2] : memref<1x32xf32, #tpu.memory_space<vmem>>, vector<1x32xf32>
    %c0_3 = arith.constant 0 : index
    %c0_4 = arith.constant 0 : index
    %2 = vector.load %arg3[%c0_3, %c0_4] : memref<1x32xf32, #tpu.memory_space<vmem>>, vector<1x32xf32>
    %cst = arith.constant dense<0.000000e+00> : vector<32xf32>
    %3 = vector.multi_reduction <add>, %0, %cst [1] : vector<32x32xf32> to vector<32xf32>
    %4 = vector.shape_cast %3 : vector<32xf32> to vector<32x1xf32>
    %cst_5 = arith.constant 3.200000e+01 : f32
    %5 = vector.broadcast %cst_5 : f32 to vector<32x1xf32>
    %6 = arith.divf %4, %5 : vector<32x1xf32>
    %7 = vector.broadcast %6 : vector<32x1xf32> to vector<32x32xf32>
    %8 = arith.subf %0, %7 : vector<32x32xf32>
    %9 = arith.mulf %8, %8 : vector<32x32xf32>
    %cst_6 = arith.constant dense<0.000000e+00> : vector<32xf32>
    %10 = vector.multi_reduction <add>, %9, %cst_6 [1] : vector<32x32xf32> to vector<32xf32>
    %11 = vector.shape_cast %10 : vector<32xf32> to vector<32x1xf32>
    %cst_7 = arith.constant 3.200000e+01 : f32
    %12 = vector.broadcast %cst_7 : f32 to vector<32x1xf32>
    %13 = arith.divf %11, %12 : vector<32x1xf32>
    %14 = vector.broadcast %6 : vector<32x1xf32> to vector<32x32xf32>
    %15 = arith.subf %0, %14 : vector<32x32xf32>
    %cst_8 = arith.constant 9.99999974E-6 : f32
    %16 = vector.broadcast %cst_8 : f32 to vector<32x1xf32>
    %17 = arith.addf %13, %16 : vector<32x1xf32>
    %18 = math.rsqrt %17 : vector<32x1xf32>
    %19 = vector.broadcast %18 : vector<32x1xf32> to vector<32x32xf32>
    %20 = arith.mulf %15, %19 : vector<32x32xf32>
    %21 = vector.broadcast %1 : vector<1x32xf32> to vector<32x32xf32>
    %22 = arith.mulf %20, %21 : vector<32x32xf32>
    %23 = vector.broadcast %2 : vector<1x32xf32> to vector<32x32xf32>
    %24 = arith.addf %22, %23 : vector<32x32xf32>
    %25 = arith.truncf %24 : vector<32x32xf32> to vector<32x32xbf16>
    %c0_9 = arith.constant 0 : index
    %c0_10 = arith.constant 0 : index
    %26 = vector.load %arg4[%c0_9, %c0_10] : memref<32x96xbf16, #tpu.memory_space<vmem>>, vector<32x96xbf16>
    %cst_11 = arith.constant dense<0.000000e+00> : vector<32x96xf32>
    %27 = tpu.matmul %25, %26, %cst_11 {dimension_numbers = #tpu.dot_dimension_numbers<[1], [0], [0], [1], [0, 0, 1, 1], [], []>} : vector<32x32xbf16>, vector<32x96xbf16>, vector<32x96xf32> -> vector<32x96xf32>
    %c0_12 = arith.constant 0 : index
    %c0_13 = arith.constant 0 : index
    %28 = vector.load %arg5[%c0_12, %c0_13] : memref<1x96xf32, #tpu.memory_space<vmem>>, vector<1x96xf32>
    %29 = vector.broadcast %28 : vector<1x96xf32> to vector<32x96xf32>
    %30 = arith.addf %27, %29 : vector<32x96xf32>
    %31 = arith.truncf %30 : vector<32x96xf32> to vector<32x96xbf16>
    %c0_14 = arith.constant 0 : index
    %c0_15 = arith.constant 0 : index
    %32 = vector.load %arg6[%c0_14, %c0_15] : memref<32x96xbf16, #tpu.memory_space<vmem>>, vector<32x96xbf16>
    tpu.vector_store %arg6[%c0_14, %c0_15], %31 {strides = array<i32>} : memref<32x96xbf16, #tpu.memory_space<vmem>>, vector<32x96xbf16>,
    return
  }
  func.func @transform_0(%arg0: i32) -> (i32, i32) {
    %c0_i32 = arith.constant 0 : i32
    %c0_i32_0 = arith.constant 0 : i32
    return %arg0, %c0_i32 : i32, i32
  }
  func.func @transform_1(%arg0: i32) -> (i32, i32) {
    %c0_i32 = arith.constant 0 : i32
    %c0_i32_0 = arith.constant 0 : i32
    %c0_i32_1 = arith.constant 0 : i32
    return %c0_i32, %c0_i32_0 : i32, i32
  }
  func.func @transform_2(%arg0: i32) -> (i32, i32) {
    %c0_i32 = arith.constant 0 : i32
    %c0_i32_0 = arith.constant 0 : i32
    %c0_i32_1 = arith.constant 0 : i32
    return %c0_i32, %c0_i32_0 : i32, i32
  }
  func.func @transform_3(%arg0: i32) -> (i32, i32) {
    %c0_i32 = arith.constant 0 : i32
    %c0_i32_0 = arith.constant 0 : i32
    %c0_i32_1 = arith.constant 0 : i32
    return %c0_i32, %c0_i32_0 : i32, i32
  }
  func.func @transform_4(%arg0: i32) -> (i32, i32) {
    %c0_i32 = arith.constant 0 : i32
    %c0_i32_0 = arith.constant 0 : i32
    %c0_i32_1 = arith.constant 0 : i32
    return %c0_i32, %c0_i32_0 : i32, i32
  }
  func.func @transform_5(%arg0: i32) -> (i32, i32) {
    %c0_i32 = arith.constant 0 : i32
    %c0_i32_0 = arith.constant 0 : i32
    return %arg0, %c0_i32 : i32, i32
  }
}

module attributes {stable_mosaic.version = 11 : i64} {
  func.func @flash_attn_kernel(%arg0: i32, %arg1: i32, %arg2: i32, %arg3: memref<8x16x8xbf16, #tpu.memory_space<vmem>>, %arg4: memref<8x16x8xbf16, #tpu.memory_space<vmem>>, %arg5: memref<8x16x8xbf16, #tpu.memory_space<vmem>>, %arg6: memref<8x16x8xbf16, #tpu.memory_space<vmem>>, %arg7: memref<8x16x1xf32, #tpu.memory_space<vmem>>, %arg8: memref<8x16x1xf32, #tpu.memory_space<vmem>>, %arg9: memref<8x16x8xf32, #tpu.memory_space<vmem>>) attributes {dimension_semantics = [#tpu.dimension_semantics<parallel>, #tpu.dimension_semantics<parallel>, #tpu.dimension_semantics<arbitrary>], iteration_bounds = array<i64: 1, 1, 1>, scalar_prefetch = 0 : i64, scratch_operands = 3 : i64, tpu.core_type = #tpu.core_type<tc>, window_params = [{transform_indices = @transform_0, window_bounds = array<i64: 8, 16, 8>}, {transform_indices = @transform_1, window_bounds = array<i64: 8, 16, 8>}, {transform_indices = @transform_2, window_bounds = array<i64: 8, 16, 8>}, {transform_indices = @transform_3, window_bounds = array<i64: 8, 16, 8>}]} {
    %c0_i32 = arith.constant 0 : i32
    %0 = arith.cmpi eq, %arg2, %c0_i32 : i32
    %1 = arith.extui %0 : i1 to i32
    %c0_i32_0 = arith.constant 0 : i32
    %2 = arith.cmpi ne, %1, %c0_i32_0 : i32
    scf.if %2 {
      %cst = arith.constant -1.000000e+30 : f32
      %23 = vector.broadcast %cst : f32 to vector<8x16x1xf32>
      %c0 = arith.constant 0 : index
      %c0_11 = arith.constant 0 : index
      %c0_12 = arith.constant 0 : index
      %24 = vector.load %arg7[%c0, %c0_11, %c0_12] : memref<8x16x1xf32, #tpu.memory_space<vmem>>, vector<8x16x1xf32>
      tpu.vector_store %arg7[%c0, %c0_11, %c0_12], %23 {strides = array<i32>} : memref<8x16x1xf32, #tpu.memory_space<vmem>>, vector<8x16x1xf32>,
      %cst_13 = arith.constant 0.000000e+00 : f32
      %25 = vector.broadcast %cst_13 : f32 to vector<8x16x1xf32>
      %c0_14 = arith.constant 0 : index
      %c0_15 = arith.constant 0 : index
      %c0_16 = arith.constant 0 : index
      %26 = vector.load %arg8[%c0_14, %c0_15, %c0_16] : memref<8x16x1xf32, #tpu.memory_space<vmem>>, vector<8x16x1xf32>
      tpu.vector_store %arg8[%c0_14, %c0_15, %c0_16], %25 {strides = array<i32>} : memref<8x16x1xf32, #tpu.memory_space<vmem>>, vector<8x16x1xf32>,
      %cst_17 = arith.constant 0.000000e+00 : f32
      %27 = vector.broadcast %cst_17 : f32 to vector<8x16x8xf32>
      %c0_18 = arith.constant 0 : index
      %c0_19 = arith.constant 0 : index
      %c0_20 = arith.constant 0 : index
      %28 = vector.load %arg9[%c0_18, %c0_19, %c0_20] : memref<8x16x8xf32, #tpu.memory_space<vmem>>, vector<8x16x8xf32>
      tpu.vector_store %arg9[%c0_18, %c0_19, %c0_20], %27 {strides = array<i32>} : memref<8x16x8xf32, #tpu.memory_space<vmem>>, vector<8x16x8xf32>,
    } else {
    }
    %c16_i32 = arith.constant 16 : i32
    %3 = arith.muli %arg1, %c16_i32 : i32
    %c16_i32_1 = arith.constant 16 : i32
    %4 = arith.addi %3, %c16_i32_1 : i32
    %c1_i32 = arith.constant 1 : i32
    %5 = arith.subi %4, %c1_i32 : i32
    %c16_i32_2 = arith.constant 16 : i32
    %6 = arith.muli %arg2, %c16_i32_2 : i32
    %7 = arith.cmpi sge, %5, %6 : i32
    %c16_i32_3 = arith.constant 16 : i32
    %8 = arith.muli %arg2, %c16_i32_3 : i32
    %c16_i32_4 = arith.constant 16 : i32
    %9 = arith.addi %8, %c16_i32_4 : i32
    %c1_i32_5 = arith.constant 1 : i32
    %10 = arith.subi %9, %c1_i32_5 : i32
    %c16_i32_6 = arith.constant 16 : i32
    %11 = arith.muli %arg1, %c16_i32_6 : i32
    %12 = arith.cmpi sgt, %10, %11 : i32
    %13 = arith.andi %7, %12 : i1
    %14 = arith.extui %13 : i1 to i32
    %c0_i32_7 = arith.constant 0 : i32
    %15 = arith.cmpi ne, %14, %c0_i32_7 : i32
    scf.if %15 {
      %c0 = arith.constant 0 : index
      %c0_11 = arith.constant 0 : index
      %c0_12 = arith.constant 0 : index
      %23 = vector.load %arg3[%c0, %c0_11, %c0_12] : memref<8x16x8xbf16, #tpu.memory_space<vmem>>, vector<8x16x8xbf16>
      %c0_13 = arith.constant 0 : index
      %c0_14 = arith.constant 0 : index
      %c0_15 = arith.constant 0 : index
      %24 = vector.load %arg4[%c0_13, %c0_14, %c0_15] : memref<8x16x8xbf16, #tpu.memory_space<vmem>>, vector<8x16x8xbf16>
      %c0_16 = arith.constant 0 : index
      %c0_17 = arith.constant 0 : index
      %c0_18 = arith.constant 0 : index
      %25 = vector.load %arg5[%c0_16, %c0_17, %c0_18] : memref<8x16x8xbf16, #tpu.memory_space<vmem>>, vector<8x16x8xbf16>
      "tpu.trace_start"() <{level = 10 : i32, message = "bqd,bkd->bqk"}> : () -> ()
      %cst = arith.constant dense<0.000000e+00> : vector<8x16x16xf32>
      %26 = tpu.matmul %23, %24, %cst {dimension_numbers = #tpu.dot_dimension_numbers<[2], [2], [1], [1], [0, 0, 0, 1, 1, 1], [0], [0]>} : vector<8x16x8xbf16>, vector<8x16x8xbf16>, vector<8x16x16xf32> -> vector<8x16x16xf32>
      "tpu.trace_stop"() : () -> ()
      %c16_i32_19 = arith.constant 16 : i32
      %27 = arith.muli %arg1, %c16_i32_19 : i32
      %28 = tpu.iota {dimensions = array<i32: 0>} : vector<16x16xi32>
      %29 = vector.broadcast %27 : i32 to vector<16x16xi32>
      %30 = arith.addi %29, %28 : vector<16x16xi32>
      %c16_i32_20 = arith.constant 16 : i32
      %31 = arith.muli %arg2, %c16_i32_20 : i32
      %32 = tpu.iota {dimensions = array<i32: 1>} : vector<16x16xi32>
      %33 = vector.broadcast %31 : i32 to vector<16x16xi32>
      %34 = arith.addi %33, %32 : vector<16x16xi32>
      %35 = arith.cmpi sge, %30, %34 : vector<16x16xi32>
      %36 = vector.shape_cast %35 : vector<16x16xi1> to vector<1x16x16xi1>
      %cst_21 = arith.constant -1.000000e+30 : f32
      %37 = vector.shape_cast %36 : vector<1x16x16xi1> to vector<1x16x16xi1>
      %38 = vector.broadcast %37 : vector<1x16x16xi1> to vector<8x16x16xi1>
      %39 = vector.broadcast %cst_21 : f32 to vector<8x16x16xf32>
      %40 = arith.select %38, %26, %39 : vector<8x16x16xi1>, vector<8x16x16xf32>
      %c0_22 = arith.constant 0 : index
      %c0_23 = arith.constant 0 : index
      %c0_24 = arith.constant 0 : index
      %41 = vector.load %arg7[%c0_22, %c0_23, %c0_24] : memref<8x16x1xf32, #tpu.memory_space<vmem>>, vector<8x16x1xf32>
      %cst_25 = arith.constant dense<0xFF800000> : vector<8x16xf32>
      %42 = vector.multi_reduction <maximumf>, %40, %cst_25 [2] : vector<8x16x16xf32> to vector<8x16xf32>
      %43 = vector.shape_cast %42 : vector<8x16xf32> to vector<8x16x1xf32>
      %44 = arith.maximumf %41, %43 : vector<8x16x1xf32>
      %45 = arith.subf %41, %44 : vector<8x16x1xf32>
      %46 = math.exp %45 : vector<8x16x1xf32>
      %47 = vector.broadcast %44 : vector<8x16x1xf32> to vector<8x16x16xf32>
      %48 = arith.subf %40, %47 : vector<8x16x16xf32>
      %49 = math.exp %48 : vector<8x16x16xf32>
      %c0_26 = arith.constant 0 : index
      %c0_27 = arith.constant 0 : index
      %c0_28 = arith.constant 0 : index
      %50 = vector.load %arg8[%c0_26, %c0_27, %c0_28] : memref<8x16x1xf32, #tpu.memory_space<vmem>>, vector<8x16x1xf32>
      %51 = arith.mulf %46, %50 : vector<8x16x1xf32>
      %cst_29 = arith.constant dense<0.000000e+00> : vector<8x16xf32>
      %52 = vector.multi_reduction <add>, %49, %cst_29 [2] : vector<8x16x16xf32> to vector<8x16xf32>
      %53 = vector.shape_cast %52 : vector<8x16xf32> to vector<8x16x1xf32>
      %54 = arith.addf %51, %53 : vector<8x16x1xf32>
      %c0_30 = arith.constant 0 : index
      %c0_31 = arith.constant 0 : index
      %c0_32 = arith.constant 0 : index
      %55 = vector.load %arg8[%c0_30, %c0_31, %c0_32] : memref<8x16x1xf32, #tpu.memory_space<vmem>>, vector<8x16x1xf32>
      tpu.vector_store %arg8[%c0_30, %c0_31, %c0_32], %54 {strides = array<i32>} : memref<8x16x1xf32, #tpu.memory_space<vmem>>, vector<8x16x1xf32>,
      %c0_33 = arith.constant 0 : index
      %c0_34 = arith.constant 0 : index
      %c0_35 = arith.constant 0 : index
      %56 = vector.load %arg9[%c0_33, %c0_34, %c0_35] : memref<8x16x8xf32, #tpu.memory_space<vmem>>, vector<8x16x8xf32>
      %57 = vector.broadcast %46 : vector<8x16x1xf32> to vector<8x16x8xf32>
      %58 = arith.mulf %57, %56 : vector<8x16x8xf32>
      %59 = arith.truncf %49 : vector<8x16x16xf32> to vector<8x16x16xbf16>
      "tpu.trace_start"() <{level = 10 : i32, message = "bqk,bkd->bqd"}> : () -> ()
      %cst_36 = arith.constant dense<0.000000e+00> : vector<8x16x8xf32>
      %60 = tpu.matmul %59, %25, %cst_36 {dimension_numbers = #tpu.dot_dimension_numbers<[2], [1], [1], [2], [0, 0, 0, 1, 1, 2], [0], [0]>} : vector<8x16x16xbf16>, vector<8x16x8xbf16>, vector<8x16x8xf32> -> vector<8x16x8xf32>
      "tpu.trace_stop"() : () -> ()
      %61 = arith.addf %58, %60 : vector<8x16x8xf32>
      %c0_37 = arith.constant 0 : index
      %c0_38 = arith.constant 0 : index
      %c0_39 = arith.constant 0 : index
      %62 = vector.load %arg9[%c0_37, %c0_38, %c0_39] : memref<8x16x8xf32, #tpu.memory_space<vmem>>, vector<8x16x8xf32>
      tpu.vector_store %arg9[%c0_37, %c0_38, %c0_39], %61 {strides = array<i32>} : memref<8x16x8xf32, #tpu.memory_space<vmem>>, vector<8x16x8xf32>,
      %c0_40 = arith.constant 0 : index
      %c0_41 = arith.constant 0 : index
      %c0_42 = arith.constant 0 : index
      %63 = vector.load %arg7[%c0_40, %c0_41, %c0_42] : memref<8x16x1xf32, #tpu.memory_space<vmem>>, vector<8x16x1xf32>
      tpu.vector_store %arg7[%c0_40, %c0_41, %c0_42], %44 {strides = array<i32>} : memref<8x16x1xf32, #tpu.memory_space<vmem>>, vector<8x16x1xf32>,
    } else {
    }
    %true = arith.constant true
    %16 = arith.xori %12, %true : i1
    %17 = arith.andi %7, %16 : i1
    %18 = arith.extui %17 : i1 to i32
    %c0_i32_8 = arith.constant 0 : i32
    %19 = arith.cmpi ne, %18, %c0_i32_8 : i32
    scf.if %19 {
      %c0 = arith.constant 0 : index
      %c0_11 = arith.constant 0 : index
      %c0_12 = arith.constant 0 : index
      %23 = vector.load %arg3[%c0, %c0_11, %c0_12] : memref<8x16x8xbf16, #tpu.memory_space<vmem>>, vector<8x16x8xbf16>
      %c0_13 = arith.constant 0 : index
      %c0_14 = arith.constant 0 : index
      %c0_15 = arith.constant 0 : index
      %24 = vector.load %arg4[%c0_13, %c0_14, %c0_15] : memref<8x16x8xbf16, #tpu.memory_space<vmem>>, vector<8x16x8xbf16>
      %c0_16 = arith.constant 0 : index
      %c0_17 = arith.constant 0 : index
      %c0_18 = arith.constant 0 : index
      %25 = vector.load %arg5[%c0_16, %c0_17, %c0_18] : memref<8x16x8xbf16, #tpu.memory_space<vmem>>, vector<8x16x8xbf16>
      "tpu.trace_start"() <{level = 10 : i32, message = "bqd,bkd->bqk"}> : () -> ()
      %cst = arith.constant dense<0.000000e+00> : vector<8x16x16xf32>
      %26 = tpu.matmul %23, %24, %cst {dimension_numbers = #tpu.dot_dimension_numbers<[2], [2], [1], [1], [0, 0, 0, 1, 1, 1], [0], [0]>} : vector<8x16x8xbf16>, vector<8x16x8xbf16>, vector<8x16x16xf32> -> vector<8x16x16xf32>
      "tpu.trace_stop"() : () -> ()
      %c0_19 = arith.constant 0 : index
      %c0_20 = arith.constant 0 : index
      %c0_21 = arith.constant 0 : index
      %27 = vector.load %arg7[%c0_19, %c0_20, %c0_21] : memref<8x16x1xf32, #tpu.memory_space<vmem>>, vector<8x16x1xf32>
      %cst_22 = arith.constant dense<0xFF800000> : vector<8x16xf32>
      %28 = vector.multi_reduction <maximumf>, %26, %cst_22 [2] : vector<8x16x16xf32> to vector<8x16xf32>
      %29 = vector.shape_cast %28 : vector<8x16xf32> to vector<8x16x1xf32>
      %30 = arith.maximumf %27, %29 : vector<8x16x1xf32>
      %31 = arith.subf %27, %30 : vector<8x16x1xf32>
      %32 = math.exp %31 : vector<8x16x1xf32>
      %33 = vector.broadcast %30 : vector<8x16x1xf32> to vector<8x16x16xf32>
      %34 = arith.subf %26, %33 : vector<8x16x16xf32>
      %35 = math.exp %34 : vector<8x16x16xf32>
      %c0_23 = arith.constant 0 : index
      %c0_24 = arith.constant 0 : index
      %c0_25 = arith.constant 0 : index
      %36 = vector.load %arg8[%c0_23, %c0_24, %c0_25] : memref<8x16x1xf32, #tpu.memory_space<vmem>>, vector<8x16x1xf32>
      %37 = arith.mulf %32, %36 : vector<8x16x1xf32>
      %cst_26 = arith.constant dense<0.000000e+00> : vector<8x16xf32>
      %38 = vector.multi_reduction <add>, %35, %cst_26 [2] : vector<8x16x16xf32> to vector<8x16xf32>
      %39 = vector.shape_cast %38 : vector<8x16xf32> to vector<8x16x1xf32>
      %40 = arith.addf %37, %39 : vector<8x16x1xf32>
      %c0_27 = arith.constant 0 : index
      %c0_28 = arith.constant 0 : index
      %c0_29 = arith.constant 0 : index
      %41 = vector.load %arg8[%c0_27, %c0_28, %c0_29] : memref<8x16x1xf32, #tpu.memory_space<vmem>>, vector<8x16x1xf32>
      tpu.vector_store %arg8[%c0_27, %c0_28, %c0_29], %40 {strides = array<i32>} : memref<8x16x1xf32, #tpu.memory_space<vmem>>, vector<8x16x1xf32>,
      %c0_30 = arith.constant 0 : index
      %c0_31 = arith.constant 0 : index
      %c0_32 = arith.constant 0 : index
      %42 = vector.load %arg9[%c0_30, %c0_31, %c0_32] : memref<8x16x8xf32, #tpu.memory_space<vmem>>, vector<8x16x8xf32>
      %43 = vector.broadcast %32 : vector<8x16x1xf32> to vector<8x16x8xf32>
      %44 = arith.mulf %43, %42 : vector<8x16x8xf32>
      %45 = arith.truncf %35 : vector<8x16x16xf32> to vector<8x16x16xbf16>
      "tpu.trace_start"() <{level = 10 : i32, message = "bqk,bkd->bqd"}> : () -> ()
      %cst_33 = arith.constant dense<0.000000e+00> : vector<8x16x8xf32>
      %46 = tpu.matmul %45, %25, %cst_33 {dimension_numbers = #tpu.dot_dimension_numbers<[2], [1], [1], [2], [0, 0, 0, 1, 1, 2], [0], [0]>} : vector<8x16x16xbf16>, vector<8x16x8xbf16>, vector<8x16x8xf32> -> vector<8x16x8xf32>
      "tpu.trace_stop"() : () -> ()
      %47 = arith.addf %44, %46 : vector<8x16x8xf32>
      %c0_34 = arith.constant 0 : index
      %c0_35 = arith.constant 0 : index
      %c0_36 = arith.constant 0 : index
      %48 = vector.load %arg9[%c0_34, %c0_35, %c0_36] : memref<8x16x8xf32, #tpu.memory_space<vmem>>, vector<8x16x8xf32>
      tpu.vector_store %arg9[%c0_34, %c0_35, %c0_36], %47 {strides = array<i32>} : memref<8x16x8xf32, #tpu.memory_space<vmem>>, vector<8x16x8xf32>,
      %c0_37 = arith.constant 0 : index
      %c0_38 = arith.constant 0 : index
      %c0_39 = arith.constant 0 : index
      %49 = vector.load %arg7[%c0_37, %c0_38, %c0_39] : memref<8x16x1xf32, #tpu.memory_space<vmem>>, vector<8x16x1xf32>
      tpu.vector_store %arg7[%c0_37, %c0_38, %c0_39], %30 {strides = array<i32>} : memref<8x16x1xf32, #tpu.memory_space<vmem>>, vector<8x16x1xf32>,
    } else {
    }
    %c0_i32_9 = arith.constant 0 : i32
    %20 = arith.cmpi eq, %arg2, %c0_i32_9 : i32
    %21 = arith.extui %20 : i1 to i32
    %c0_i32_10 = arith.constant 0 : i32
    %22 = arith.cmpi ne, %21, %c0_i32_10 : i32
    scf.if %22 {
      %c0 = arith.constant 0 : index
      %c0_11 = arith.constant 0 : index
      %c0_12 = arith.constant 0 : index
      %23 = vector.load %arg8[%c0, %c0_11, %c0_12] : memref<8x16x1xf32, #tpu.memory_space<vmem>>, vector<8x16x1xf32>
      %24 = tpu.reciprocal %23 {approx = true} : vector<8x16x1xf32> -> vector<8x16x1xf32>
      %c0_13 = arith.constant 0 : index
      %c0_14 = arith.constant 0 : index
      %c0_15 = arith.constant 0 : index
      %25 = vector.load %arg9[%c0_13, %c0_14, %c0_15] : memref<8x16x8xf32, #tpu.memory_space<vmem>>, vector<8x16x8xf32>
      %26 = vector.broadcast %24 : vector<8x16x1xf32> to vector<8x16x8xf32>
      %27 = arith.mulf %25, %26 : vector<8x16x8xf32>
      %28 = arith.truncf %27 : vector<8x16x8xf32> to vector<8x16x8xbf16>
      %c0_16 = arith.constant 0 : index
      %c0_17 = arith.constant 0 : index
      %c0_18 = arith.constant 0 : index
      %29 = vector.load %arg6[%c0_16, %c0_17, %c0_18] : memref<8x16x8xbf16, #tpu.memory_space<vmem>>, vector<8x16x8xbf16>
      tpu.vector_store %arg6[%c0_16, %c0_17, %c0_18], %28 {strides = array<i32>} : memref<8x16x8xbf16, #tpu.memory_space<vmem>>, vector<8x16x8xbf16>,
    } else {
    }
    return
  }
  func.func @transform_0(%arg0: i32, %arg1: i32, %arg2: i32) -> (i32, i32, i32) {
    %c0_i32 = arith.constant 0 : i32
    %c0_i32_0 = arith.constant 0 : i32
    return %arg0, %arg1, %c0_i32 : i32, i32, i32
  }
  func.func @transform_1(%arg0: i32, %arg1: i32, %arg2: i32) -> (i32, i32, i32) {
    %c0_i32 = arith.constant 0 : i32
    %c0_i32_0 = arith.constant 0 : i32
    return %arg0, %arg2, %c0_i32 : i32, i32, i32
  }
  func.func @transform_2(%arg0: i32, %arg1: i32, %arg2: i32) -> (i32, i32, i32) {
    %c0_i32 = arith.constant 0 : i32
    %c0_i32_0 = arith.constant 0 : i32
    return %arg0, %arg2, %c0_i32 : i32, i32, i32
  }
  func.func @transform_3(%arg0: i32, %arg1: i32, %arg2: i32) -> (i32, i32, i32) {
    %c0_i32 = arith.constant 0 : i32
    %c0_i32_0 = arith.constant 0 : i32
    return %arg0, %arg1, %c0_i32 : i32, i32, i32
  }
}

module attributes {stable_mosaic.version = 11 : i64} {
  func.func @proj_mlp_kernel(%arg0: i32, %arg1: i32, %arg2: memref<32x32xf32, #tpu.memory_space<vmem>>, %arg3: memref<32x32xbf16, #tpu.memory_space<vmem>>, %arg4: memref<32x32xbf16, #tpu.memory_space<vmem>>, %arg5: memref<1x32xf32, #tpu.memory_space<vmem>>, %arg6: memref<1x32xf32, #tpu.memory_space<vmem>>, %arg7: memref<1x32xf32, #tpu.memory_space<vmem>>, %arg8: memref<32x128xbf16, #tpu.memory_space<vmem>>, %arg9: memref<1x128xf32, #tpu.memory_space<vmem>>, %arg10: memref<128x32xbf16, #tpu.memory_space<vmem>>, %arg11: memref<1x32xf32, #tpu.memory_space<vmem>>, %arg12: memref<32x32xf32, #tpu.memory_space<vmem>>, %arg13: memref<32x32xf32, #tpu.memory_space<vmem>>, %arg14: memref<32x32xbf16, #tpu.memory_space<vmem>>, %arg15: memref<32x32xf32, #tpu.memory_space<vmem>>) attributes {dimension_semantics = [#tpu.dimension_semantics<parallel>, #tpu.dimension_semantics<arbitrary>], iteration_bounds = array<i64: 1, 1>, scalar_prefetch = 0 : i64, scratch_operands = 3 : i64, tpu.core_type = #tpu.core_type<tc>, window_params = [{transform_indices = @transform_0, window_bounds = array<i64: 32, 32>}, {transform_indices = @transform_1, window_bounds = array<i64: 32, 32>}, {pipeline_mode = #tpu.pipeline_mode<synchronous>, transform_indices = @transform_2, window_bounds = array<i64: 32, 32>}, {pipeline_mode = #tpu.pipeline_mode<synchronous>, transform_indices = @transform_3, window_bounds = array<i64: 1, 32>}, {pipeline_mode = #tpu.pipeline_mode<synchronous>, transform_indices = @transform_4, window_bounds = array<i64: 1, 32>}, {pipeline_mode = #tpu.pipeline_mode<synchronous>, transform_indices = @transform_5, window_bounds = array<i64: 1, 32>}, {transform_indices = @transform_6, window_bounds = array<i64: 32, 128>}, {transform_indices = @transform_7, window_bounds = array<i64: 1, 128>}, {transform_indices = @transform_8, window_bounds = array<i64: 128, 32>}, {pipeline_mode = #tpu.pipeline_mode<synchronous>, transform_indices = @transform_9, window_bounds = array<i64: 1, 32>}, {transform_indices = @transform_10, window_bounds = array<i64: 32, 32>}]} {
    %c0_i32 = arith.constant 0 : i32
    %0 = arith.cmpi eq, %arg1, %c0_i32 : i32
    %1 = arith.extui %0 : i1 to i32
    %c0_i32_0 = arith.constant 0 : i32
    %2 = arith.cmpi ne, %1, %c0_i32_0 : i32
    scf.if %2 {
      %c0_19 = arith.constant 0 : index
      %c0_20 = arith.constant 0 : index
      %31 = vector.load %arg3[%c0_19, %c0_20] : memref<32x32xbf16, #tpu.memory_space<vmem>>, vector<32x32xbf16>
      %c0_21 = arith.constant 0 : index
      %c0_22 = arith.constant 0 : index
      %32 = vector.load %arg4[%c0_21, %c0_22] : memref<32x32xbf16, #tpu.memory_space<vmem>>, vector<32x32xbf16>
      %cst_23 = arith.constant dense<0.000000e+00> : vector<32x32xf32>
      %33 = tpu.matmul %31, %32, %cst_23 {dimension_numbers = #tpu.dot_dimension_numbers<[1], [0], [0], [1], [0, 0, 1, 1], [], []>} : vector<32x32xbf16>, vector<32x32xbf16>, vector<32x32xf32> -> vector<32x32xf32>
      %c0_24 = arith.constant 0 : index
      %c0_25 = arith.constant 0 : index
      %34 = vector.load %arg5[%c0_24, %c0_25] : memref<1x32xf32, #tpu.memory_space<vmem>>, vector<1x32xf32>
      %35 = vector.broadcast %34 : vector<1x32xf32> to vector<32x32xf32>
      %36 = arith.addf %33, %35 : vector<32x32xf32>
      %c0_26 = arith.constant 0 : index
      %c0_27 = arith.constant 0 : index
      %37 = vector.load %arg2[%c0_26, %c0_27] : memref<32x32xf32, #tpu.memory_space<vmem>>, vector<32x32xf32>
      %38 = arith.addf %37, %36 : vector<32x32xf32>
      %c0_28 = arith.constant 0 : index
      %c0_29 = arith.constant 0 : index
      %39 = vector.load %arg13[%c0_28, %c0_29] : memref<32x32xf32, #tpu.memory_space<vmem>>, vector<32x32xf32>
      tpu.vector_store %arg13[%c0_28, %c0_29], %38 {strides = array<i32>} : memref<32x32xf32, #tpu.memory_space<vmem>>, vector<32x32xf32>,
      %c0_30 = arith.constant 0 : index
      %c0_31 = arith.constant 0 : index
      %40 = vector.load %arg6[%c0_30, %c0_31] : memref<1x32xf32, #tpu.memory_space<vmem>>, vector<1x32xf32>
      %c0_32 = arith.constant 0 : index
      %c0_33 = arith.constant 0 : index
      %41 = vector.load %arg7[%c0_32, %c0_33] : memref<1x32xf32, #tpu.memory_space<vmem>>, vector<1x32xf32>
      %cst_34 = arith.constant dense<0.000000e+00> : vector<32xf32>
      %42 = vector.multi_reduction <add>, %38, %cst_34 [1] : vector<32x32xf32> to vector<32xf32>
      %43 = vector.shape_cast %42 : vector<32xf32> to vector<32x1xf32>
      %cst_35 = arith.constant 3.200000e+01 : f32
      %44 = vector.broadcast %cst_35 : f32 to vector<32x1xf32>
      %45 = arith.divf %43, %44 : vector<32x1xf32>
      %46 = vector.broadcast %45 : vector<32x1xf32> to vector<32x32xf32>
      %47 = arith.subf %38, %46 : vector<32x32xf32>
      %48 = arith.mulf %47, %47 : vector<32x32xf32>
      %cst_36 = arith.constant dense<0.000000e+00> : vector<32xf32>
      %49 = vector.multi_reduction <add>, %48, %cst_36 [1] : vector<32x32xf32> to vector<32xf32>
      %50 = vector.shape_cast %49 : vector<32xf32> to vector<32x1xf32>
      %cst_37 = arith.constant 3.200000e+01 : f32
      %51 = vector.broadcast %cst_37 : f32 to vector<32x1xf32>
      %52 = arith.divf %50, %51 : vector<32x1xf32>
      %53 = vector.broadcast %45 : vector<32x1xf32> to vector<32x32xf32>
      %54 = arith.subf %38, %53 : vector<32x32xf32>
      %cst_38 = arith.constant 9.99999974E-6 : f32
      %55 = vector.broadcast %cst_38 : f32 to vector<32x1xf32>
      %56 = arith.addf %52, %55 : vector<32x1xf32>
      %57 = math.rsqrt %56 : vector<32x1xf32>
      %58 = vector.broadcast %57 : vector<32x1xf32> to vector<32x32xf32>
      %59 = arith.mulf %54, %58 : vector<32x32xf32>
      %60 = vector.broadcast %40 : vector<1x32xf32> to vector<32x32xf32>
      %61 = arith.mulf %59, %60 : vector<32x32xf32>
      %62 = vector.broadcast %41 : vector<1x32xf32> to vector<32x32xf32>
      %63 = arith.addf %61, %62 : vector<32x32xf32>
      %64 = arith.truncf %63 : vector<32x32xf32> to vector<32x32xbf16>
      %c0_39 = arith.constant 0 : index
      %c0_40 = arith.constant 0 : index
      %65 = vector.load %arg14[%c0_39, %c0_40] : memref<32x32xbf16, #tpu.memory_space<vmem>>, vector<32x32xbf16>
      tpu.vector_store %arg14[%c0_39, %c0_40], %64 {strides = array<i32>} : memref<32x32xbf16, #tpu.memory_space<vmem>>, vector<32x32xbf16>,
      %cst_41 = arith.constant 0.000000e+00 : f32
      %66 = vector.broadcast %cst_41 : f32 to vector<32x32xf32>
      %c0_42 = arith.constant 0 : index
      %c0_43 = arith.constant 0 : index
      %67 = vector.load %arg15[%c0_42, %c0_43] : memref<32x32xf32, #tpu.memory_space<vmem>>, vector<32x32xf32>
      tpu.vector_store %arg15[%c0_42, %c0_43], %66 {strides = array<i32>} : memref<32x32xf32, #tpu.memory_space<vmem>>, vector<32x32xf32>,
    } else {
    }
    %c0 = arith.constant 0 : index
    %c0_1 = arith.constant 0 : index
    %3 = vector.load %arg14[%c0, %c0_1] : memref<32x32xbf16, #tpu.memory_space<vmem>>, vector<32x32xbf16>
    %c0_2 = arith.constant 0 : index
    %c0_3 = arith.constant 0 : index
    %4 = vector.load %arg8[%c0_2, %c0_3] : memref<32x128xbf16, #tpu.memory_space<vmem>>, vector<32x128xbf16>
    %cst = arith.constant dense<0.000000e+00> : vector<32x128xf32>
    %5 = tpu.matmul %3, %4, %cst {dimension_numbers = #tpu.dot_dimension_numbers<[1], [0], [0], [1], [0, 0, 1, 1], [], []>} : vector<32x32xbf16>, vector<32x128xbf16>, vector<32x128xf32> -> vector<32x128xf32>
    %c0_4 = arith.constant 0 : index
    %c0_5 = arith.constant 0 : index
    %6 = vector.load %arg9[%c0_4, %c0_5] : memref<1x128xf32, #tpu.memory_space<vmem>>, vector<1x128xf32>
    %7 = vector.broadcast %6 : vector<1x128xf32> to vector<32x128xf32>
    %8 = arith.addf %5, %7 : vector<32x128xf32>
    %cst_6 = arith.constant 5.000000e-01 : f32
    %9 = vector.broadcast %cst_6 : f32 to vector<32x128xf32>
    %10 = arith.mulf %9, %8 : vector<32x128xf32>
    %cst_7 = arith.constant 4.471500e-02 : f32
    %11 = vector.broadcast %cst_7 : f32 to vector<32x128xf32>
    %12 = arith.mulf %11, %8 : vector<32x128xf32>
    %13 = arith.mulf %12, %8 : vector<32x128xf32>
    %14 = arith.mulf %13, %8 : vector<32x128xf32>
    %15 = arith.addf %8, %14 : vector<32x128xf32>
    %cst_8 = arith.constant 0.797884583 : f32
    %16 = vector.broadcast %cst_8 : f32 to vector<32x128xf32>
    %17 = arith.mulf %16, %15 : vector<32x128xf32>
    %18 = math.tanh %17 : vector<32x128xf32>
    %cst_9 = arith.constant 1.000000e+00 : f32
    %19 = vector.broadcast %cst_9 : f32 to vector<32x128xf32>
    %20 = arith.addf %19, %18 : vector<32x128xf32>
    %21 = arith.mulf %10, %20 : vector<32x128xf32>
    %c0_10 = arith.constant 0 : index
    %c0_11 = arith.constant 0 : index
    %22 = vector.load %arg15[%c0_10, %c0_11] : memref<32x32xf32, #tpu.memory_space<vmem>>, vector<32x32xf32>
    %23 = arith.truncf %21 : vector<32x128xf32> to vector<32x128xbf16>
    %c0_12 = arith.constant 0 : index
    %c0_13 = arith.constant 0 : index
    %24 = vector.load %arg10[%c0_12, %c0_13] : memref<128x32xbf16, #tpu.memory_space<vmem>>, vector<128x32xbf16>
    %cst_14 = arith.constant dense<0.000000e+00> : vector<32x32xf32>
    %25 = tpu.matmul %23, %24, %cst_14 {dimension_numbers = #tpu.dot_dimension_numbers<[1], [0], [0], [1], [0, 0, 1, 1], [], []>} : vector<32x128xbf16>, vector<128x32xbf16>, vector<32x32xf32> -> vector<32x32xf32>
    %26 = arith.addf %22, %25 : vector<32x32xf32>
    %c0_15 = arith.constant 0 : index
    %c0_16 = arith.constant 0 : index
    %27 = vector.load %arg15[%c0_15, %c0_16] : memref<32x32xf32, #tpu.memory_space<vmem>>, vector<32x32xf32>
    tpu.vector_store %arg15[%c0_15, %c0_16], %26 {strides = array<i32>} : memref<32x32xf32, #tpu.memory_space<vmem>>, vector<32x32xf32>,
    %c0_i32_17 = arith.constant 0 : i32
    %28 = arith.cmpi eq, %arg1, %c0_i32_17 : i32
    %29 = arith.extui %28 : i1 to i32
    %c0_i32_18 = arith.constant 0 : i32
    %30 = arith.cmpi ne, %29, %c0_i32_18 : i32
    scf.if %30 {
      %c0_19 = arith.constant 0 : index
      %c0_20 = arith.constant 0 : index
      %31 = vector.load %arg13[%c0_19, %c0_20] : memref<32x32xf32, #tpu.memory_space<vmem>>, vector<32x32xf32>
      %c0_21 = arith.constant 0 : index
      %c0_22 = arith.constant 0 : index
      %32 = vector.load %arg15[%c0_21, %c0_22] : memref<32x32xf32, #tpu.memory_space<vmem>>, vector<32x32xf32>
      %33 = arith.addf %31, %32 : vector<32x32xf32>
      %c0_23 = arith.constant 0 : index
      %c0_24 = arith.constant 0 : index
      %34 = vector.load %arg11[%c0_23, %c0_24] : memref<1x32xf32, #tpu.memory_space<vmem>>, vector<1x32xf32>
      %35 = vector.broadcast %34 : vector<1x32xf32> to vector<32x32xf32>
      %36 = arith.addf %33, %35 : vector<32x32xf32>
      %c0_25 = arith.constant 0 : index
      %c0_26 = arith.constant 0 : index
      %37 = vector.load %arg12[%c0_25, %c0_26] : memref<32x32xf32, #tpu.memory_space<vmem>>, vector<32x32xf32>
      tpu.vector_store %arg12[%c0_25, %c0_26], %36 {strides = array<i32>} : memref<32x32xf32, #tpu.memory_space<vmem>>, vector<32x32xf32>,
    } else {
    }
    return
  }
  func.func @transform_0(%arg0: i32, %arg1: i32) -> (i32, i32) {
    %c0_i32 = arith.constant 0 : i32
    %c0_i32_0 = arith.constant 0 : i32
    return %arg0, %c0_i32 : i32, i32
  }
  func.func @transform_1(%arg0: i32, %arg1: i32) -> (i32, i32) {
    %c0_i32 = arith.constant 0 : i32
    %c0_i32_0 = arith.constant 0 : i32
    return %arg0, %c0_i32 : i32, i32
  }
  func.func @transform_2(%arg0: i32, %arg1: i32) -> (i32, i32) {
    %c0_i32 = arith.constant 0 : i32
    %c0_i32_0 = arith.constant 0 : i32
    %c0_i32_1 = arith.constant 0 : i32
    return %c0_i32, %c0_i32_0 : i32, i32
  }
  func.func @transform_3(%arg0: i32, %arg1: i32) -> (i32, i32) {
    %c0_i32 = arith.constant 0 : i32
    %c0_i32_0 = arith.constant 0 : i32
    %c0_i32_1 = arith.constant 0 : i32
    return %c0_i32, %c0_i32_0 : i32, i32
  }
  func.func @transform_4(%arg0: i32, %arg1: i32) -> (i32, i32) {
    %c0_i32 = arith.constant 0 : i32
    %c0_i32_0 = arith.constant 0 : i32
    %c0_i32_1 = arith.constant 0 : i32
    return %c0_i32, %c0_i32_0 : i32, i32
  }
  func.func @transform_5(%arg0: i32, %arg1: i32) -> (i32, i32) {
    %c0_i32 = arith.constant 0 : i32
    %c0_i32_0 = arith.constant 0 : i32
    %c0_i32_1 = arith.constant 0 : i32
    return %c0_i32, %c0_i32_0 : i32, i32
  }
  func.func @transform_6(%arg0: i32, %arg1: i32) -> (i32, i32) {
    %c0_i32 = arith.constant 0 : i32
    %c0_i32_0 = arith.constant 0 : i32
    return %c0_i32, %arg1 : i32, i32
  }
  func.func @transform_7(%arg0: i32, %arg1: i32) -> (i32, i32) {
    %c0_i32 = arith.constant 0 : i32
    %c0_i32_0 = arith.constant 0 : i32
    return %c0_i32, %arg1 : i32, i32
  }
  func.func @transform_8(%arg0: i32, %arg1: i32) -> (i32, i32) {
    %c0_i32 = arith.constant 0 : i32
    %c0_i32_0 = arith.constant 0 : i32
    return %arg1, %c0_i32 : i32, i32
  }
  func.func @transform_9(%arg0: i32, %arg1: i32) -> (i32, i32) {
    %c0_i32 = arith.constant 0 : i32
    %c0_i32_0 = arith.constant 0 : i32
    %c0_i32_1 = arith.constant 0 : i32
    return %c0_i32, %c0_i32_0 : i32, i32
  }
  func.func @transform_10(%arg0: i32, %arg1: i32) -> (i32, i32) {
    %c0_i32 = arith.constant 0 : i32
    %c0_i32_0 = arith.constant 0 : i32
    return %arg0, %c0_i32 : i32, i32
  }
}

module attributes {stable_mosaic.version = 11 : i64} {
  func.func @final_ln_kernel(%arg0: i32, %arg1: memref<32x32xf32, #tpu.memory_space<vmem>>, %arg2: memref<1x32xf32, #tpu.memory_space<vmem>>, %arg3: memref<1x32xf32, #tpu.memory_space<vmem>>, %arg4: memref<32x32xbf16, #tpu.memory_space<vmem>>) attributes {dimension_semantics = [#tpu.dimension_semantics<parallel>], iteration_bounds = array<i64: 1>, scalar_prefetch = 0 : i64, scratch_operands = 0 : i64, tpu.core_type = #tpu.core_type<tc>, window_params = [{transform_indices = @transform_0, window_bounds = array<i64: 32, 32>}, {pipeline_mode = #tpu.pipeline_mode<synchronous>, transform_indices = @transform_1, window_bounds = array<i64: 1, 32>}, {pipeline_mode = #tpu.pipeline_mode<synchronous>, transform_indices = @transform_2, window_bounds = array<i64: 1, 32>}, {transform_indices = @transform_3, window_bounds = array<i64: 32, 32>}]} {
    %c0 = arith.constant 0 : index
    %c0_0 = arith.constant 0 : index
    %0 = vector.load %arg1[%c0, %c0_0] : memref<32x32xf32, #tpu.memory_space<vmem>>, vector<32x32xf32>
    %c0_1 = arith.constant 0 : index
    %c0_2 = arith.constant 0 : index
    %1 = vector.load %arg2[%c0_1, %c0_2] : memref<1x32xf32, #tpu.memory_space<vmem>>, vector<1x32xf32>
    %c0_3 = arith.constant 0 : index
    %c0_4 = arith.constant 0 : index
    %2 = vector.load %arg3[%c0_3, %c0_4] : memref<1x32xf32, #tpu.memory_space<vmem>>, vector<1x32xf32>
    %cst = arith.constant dense<0.000000e+00> : vector<32xf32>
    %3 = vector.multi_reduction <add>, %0, %cst [1] : vector<32x32xf32> to vector<32xf32>
    %4 = vector.shape_cast %3 : vector<32xf32> to vector<32x1xf32>
    %cst_5 = arith.constant 3.200000e+01 : f32
    %5 = vector.broadcast %cst_5 : f32 to vector<32x1xf32>
    %6 = arith.divf %4, %5 : vector<32x1xf32>
    %7 = vector.broadcast %6 : vector<32x1xf32> to vector<32x32xf32>
    %8 = arith.subf %0, %7 : vector<32x32xf32>
    %9 = arith.mulf %8, %8 : vector<32x32xf32>
    %cst_6 = arith.constant dense<0.000000e+00> : vector<32xf32>
    %10 = vector.multi_reduction <add>, %9, %cst_6 [1] : vector<32x32xf32> to vector<32xf32>
    %11 = vector.shape_cast %10 : vector<32xf32> to vector<32x1xf32>
    %cst_7 = arith.constant 3.200000e+01 : f32
    %12 = vector.broadcast %cst_7 : f32 to vector<32x1xf32>
    %13 = arith.divf %11, %12 : vector<32x1xf32>
    %14 = vector.broadcast %6 : vector<32x1xf32> to vector<32x32xf32>
    %15 = arith.subf %0, %14 : vector<32x32xf32>
    %cst_8 = arith.constant 9.99999974E-6 : f32
    %16 = vector.broadcast %cst_8 : f32 to vector<32x1xf32>
    %17 = arith.addf %13, %16 : vector<32x1xf32>
    %18 = math.rsqrt %17 : vector<32x1xf32>
    %19 = vector.broadcast %18 : vector<32x1xf32> to vector<32x32xf32>
    %20 = arith.mulf %15, %19 : vector<32x32xf32>
    %21 = vector.broadcast %1 : vector<1x32xf32> to vector<32x32xf32>
    %22 = arith.mulf %20, %21 : vector<32x32xf32>
    %23 = vector.broadcast %2 : vector<1x32xf32> to vector<32x32xf32>
    %24 = arith.addf %22, %23 : vector<32x32xf32>
    %25 = arith.truncf %24 : vector<32x32xf32> to vector<32x32xbf16>
    %c0_9 = arith.constant 0 : index
    %c0_10 = arith.constant 0 : index
    %26 = vector.load %arg4[%c0_9, %c0_10] : memref<32x32xbf16, #tpu.memory_space<vmem>>, vector<32x32xbf16>
    tpu.vector_store %arg4[%c0_9, %c0_10], %25 {strides = array<i32>} : memref<32x32xbf16, #tpu.memory_space<vmem>>, vector<32x32xbf16>,
    return
  }
  func.func @transform_0(%arg0: i32) -> (i32, i32) {
    %c0_i32 = arith.constant 0 : i32
    %c0_i32_0 = arith.constant 0 : i32
    return %arg0, %c0_i32 : i32, i32
  }
  func.func @transform_1(%arg0: i32) -> (i32, i32) {
    %c0_i32 = arith.constant 0 : i32
    %c0_i32_0 = arith.constant 0 : i32
    %c0_i32_1 = arith.constant 0 : i32
    return %c0_i32, %c0_i32_0 : i32, i32
  }
  func.func @transform_2(%arg0: i32) -> (i32, i32) {
    %c0_i32 = arith.constant 0 : i32
    %c0_i32_0 = arith.constant 0 : i32
    %c0_i32_1 = arith.constant 0 : i32
    return %c0_i32, %c0_i32_0 : i32, i32
  }
  func.func @transform_3(%arg0: i32) -> (i32, i32) {
    %c0_i32 = arith.constant 0 : i32
    %c0_i32_0 = arith.constant 0 : i32
    return %arg0, %c0_i32 : i32, i32
  }
}

module attributes {stable_mosaic.version = 11 : i64} {
  func.func @lm_head_kernel(%arg0: i32, %arg1: i32, %arg2: memref<32x32xbf16, #tpu.memory_space<vmem>>, %arg3: memref<32x128xbf16, #tpu.memory_space<vmem>>, %arg4: memref<32x128xbf16, #tpu.memory_space<vmem>>) attributes {dimension_semantics = [#tpu.dimension_semantics<parallel>, #tpu.dimension_semantics<parallel>], iteration_bounds = array<i64: 1, 1>, scalar_prefetch = 0 : i64, scratch_operands = 0 : i64, tpu.core_type = #tpu.core_type<tc>, window_params = [{transform_indices = @transform_0, window_bounds = array<i64: 32, 32>}, {transform_indices = @transform_1, window_bounds = array<i64: 32, 128>}, {transform_indices = @transform_2, window_bounds = array<i64: 32, 128>}]} {
    %c0 = arith.constant 0 : index
    %c0_0 = arith.constant 0 : index
    %0 = vector.load %arg2[%c0, %c0_0] : memref<32x32xbf16, #tpu.memory_space<vmem>>, vector<32x32xbf16>
    %c0_1 = arith.constant 0 : index
    %c0_2 = arith.constant 0 : index
    %1 = vector.load %arg3[%c0_1, %c0_2] : memref<32x128xbf16, #tpu.memory_space<vmem>>, vector<32x128xbf16>
    %cst = arith.constant dense<0.000000e+00> : vector<32x128xf32>
    %2 = tpu.matmul %0, %1, %cst {dimension_numbers = #tpu.dot_dimension_numbers<[1], [0], [0], [1], [0, 0, 1, 1], [], []>} : vector<32x32xbf16>, vector<32x128xbf16>, vector<32x128xf32> -> vector<32x128xf32>
    %3 = arith.truncf %2 : vector<32x128xf32> to vector<32x128xbf16>
    %c0_3 = arith.constant 0 : index
    %c0_4 = arith.constant 0 : index
    %4 = vector.load %arg4[%c0_3, %c0_4] : memref<32x128xbf16, #tpu.memory_space<vmem>>, vector<32x128xbf16>
    tpu.vector_store %arg4[%c0_3, %c0_4], %3 {strides = array<i32>} : memref<32x128xbf16, #tpu.memory_space<vmem>>, vector<32x128xbf16>,
    return
  }
  func.func @transform_0(%arg0: i32, %arg1: i32) -> (i32, i32) {
    %c0_i32 = arith.constant 0 : i32
    %c0_i32_0 = arith.constant 0 : i32
    return %arg1, %c0_i32 : i32, i32
  }
  func.func @transform_1(%arg0: i32, %arg1: i32) -> (i32, i32) {
    %c0_i32 = arith.constant 0 : i32
    %c0_i32_0 = arith.constant 0 : i32
    return %c0_i32, %arg0 : i32, i32
  }
  func.func @transform_2(%arg0: i32, %arg1: i32) -> (i32, i32) {
    %c0_i32 = arith.constant 0 : i32
    return %arg1, %arg0 : i32, i32
  }
}

</mosaic_0001>

<bundles_post_ra>
// kernel: gpt2_forward.8
= control target key start
LH: loop header
LB: loop body
LE: loop exit
PB: predicated region body
PF: predicated region fallthrough
CT: control target
= control target key end

     0   :  { %vm27_vm0 = vcmask 261120   ;;  %vm197_vm1 = vcmask 781312   ;;  %s322_s0 = inlined_call_operand.vmem [shape: f32[32,32], index: 0, kind: input, shape index: {}]   ;;  %s323_s3 = inlined_call_operand.vmem [shape: bf16[32,96], index: 3, kind: input, shape index: {}]   ;;  %s324_s1 = inlined_call_operand.vmem [shape: f32[1,32], index: 1, kind: input, shape index: {}]   ;;  %s325_s2 = inlined_call_operand.vmem [shape: f32[1,32], index: 2, kind: input, shape index: {}]   ;;  %s326_s4 = inlined_call_operand.vmem [shape: f32[1,96], index: 4, kind: input, shape index: {}]   ;;  %s327_s5 = inlined_call_operand.vmem [shape: bf16[32,96], index: 5, kind: output, shape index: {}]  }
   0x1   :  { %v21_v0 = vld [vmem:[%s322_s0] sm:$0xff]  ;;  %v23_v1 = vld [vmem:[%s322_s0 + $0x10] sm:$0xff]  ;;  %v22_v2 = vld [vmem:[%s322_s0 + $0x8] sm:$0xff] }
   0x2   :  { %v28_v3 = vsel %vm27_vm0, %v21_v0, 0.0  ;;  %v34_v4 = vsel %vm27_vm0, %v23_v1, 0.0  ;;  %v24_v5 = vld [vmem:[%s322_s0 + $0x18] sm:$0xff]  ;;  %v31_v6 = vsel %vm27_vm0, %v22_v2, 0.0  ;;  %v233_v28 = vld [vmem:[%s323_s3] sm:$0xff]   ;;  %v234_v29 = vld [vmem:[%s323_s3 + $0x8] sm:$0xff]  }
   0x3   :  { %29 = vadd.xlane.f32.xlu0 %v28_v3  ;;  %35 = vadd.xlane.f32.xlu1 %v34_v4  ;;  %v37_v7 = vsel %vm27_vm0, %v24_v5, 0.0  ;;  %v206_v44 = vld [vmem:[%s324_s1] ss:$0 sm:$0xff] }
   0x4   :  { %225 = vmatprep.subr.bf16.mxu0 %v233_v28  ;;  %v207_v50 = vld [vmem:[%s325_s2] ss:$0 sm:$0xff] }
   0x5   :  { %226 = vmatpush3.bf16.msra.mxu0 %v233_v28  ;;  %v208_v62 = vld [vmem:[%s326_s4] ss:$0 sm:$0xff] }
   0x6   :  { %227 = vmatprep.subr.bf16.mxu0 %v234_v29 }
   0x7   :  { %32 = vadd.xlane.f32.xlu0 %v31_v6  ;;  %38 = vadd.xlane.f32.xlu1 %v37_v7 }
   0x9   :  { %228 = vmatpush3.bf16.msra.mxu0 %v234_v29 }
  0x90   :  { %v30_v8 = vpop.xlane.xlu0 %29  ;;  %v36_v9 = vpop.xlane.xlu1 %35 }
  0x91   :  { %v41_v10 = vmul.f32 0.03125, %v30_v8  ;;  %v43_v11 = vmul.f32 0.03125, %v36_v9 }
  0x93   :  { %v45_v12 = vsub.f32 %v21_v0, %v41_v10  ;;  %v47_v13 = vsub.f32 %v23_v1, %v43_v11 }
  0x94   :  { %v33_v14 = vpop.xlane.xlu0 %32  ;;  %v39_v15 = vpop.xlane.xlu1 %38 }
  0x95   :  { %v42_v16 = vmul.f32 0.03125, %v33_v14  ;;  %v44_v17 = vmul.f32 0.03125, %v39_v15  ;;  %v49_v18 = vmul.f32 %v45_v12, %v45_v12  ;;  %v51_v19 = vmul.f32 %v47_v13, %v47_v13 }
  0x97   :  { %v46_v20 = vsub.f32 %v22_v2, %v42_v16  ;;  %v48_v21 = vsub.f32 %v24_v5, %v44_v17  ;;  %v53_v22 = vsel %vm27_vm0, %v49_v18, 0.0  ;;  %v59_v23 = vsel %vm27_vm0, %v51_v19, 0.0 }
  0x98   :  { %54 = vadd.xlane.f32.xlu0 %v53_v22 }
  0x99   :  { %v50_v24 = vmul.f32 %v46_v20, %v46_v20  ;;  %v52_v25 = vmul.f32 %v48_v21, %v48_v21 }
  0x9b   :  { %v56_v26 = vsel %vm27_vm0, %v50_v24, 0.0  ;;  %v62_v27 = vsel %vm27_vm0, %v52_v25, 0.0 }
  0x9c   :  { %60 = vadd.xlane.f32.xlu0 %v59_v23  ;;  %57 = vadd.xlane.f32.xlu1 %v56_v26 }
  0xa0   :  { %63 = vadd.xlane.f32.xlu1 %v62_v27 }
 0x125   :  { %v55_v30 = vpop.xlane.xlu0 %54 }
 0x126   :  { %v65_v31 = vmul.f32 0.03125, %v55_v30 }
 0x128   :  { %v69_v32 = vadd.f32 1e-05, %v65_v31 }
 0x129   :  { %v58_v33 = vpop.xlane.xlu1 %57  ;;  %v61_v34 = vpop.xlane.xlu0 %60 }
 0x12a   :  { %235 = vrsqrt.f32 %v69_v32  ;;  %v66_v35 = vmul.f32 0.03125, %v58_v33  ;;  %v67_v36 = vmul.f32 0.03125, %v61_v34 }
 0x12c   :  { %v70_v37 = vadd.f32 1e-05, %v66_v35  ;;  %v71_v38 = vadd.f32 1e-05, %v67_v36 }
 0x12d   :  { %v64_v39 = vpop.xlane.xlu1 %63 }
 0x12e   :  { %237 = vrsqrt.f32 %v70_v37  ;;  %v68_v40 = vmul.f32 0.03125, %v64_v39 }
 0x12f   :  { %239 = vrsqrt.f32 %v71_v38 }
 0x130   :  { %v72_v41 = vadd.f32 1e-05, %v68_v40 }
 0x132   :  { %241 = vrsqrt.f32 %v72_v41 }
 0x134   :  { %v236_v42 = vpop.eup %235 }
 0x135   :  { %v77_v43 = vmul.f32 %v236_v42, %v45_v12 }
 0x137   :  { %v87_v48 = vmul.f32 %v206_v44, %v77_v43 }
 0x138   :  { %v238_v45 = vpop.eup %237 }
 0x139   :  { %v240_v46 = vpop.eup %239  ;;  %v78_v47 = vmul.f32 %v238_v45, %v46_v20  ;;  %v97_v54 = vadd.f32 %v207_v50, %v87_v48 }
 0x13a   :  { %v79_v49 = vmul.f32 %v240_v46, %v47_v13 }
 0x13b   :  { %v88_v51 = vmul.f32 %v206_v44, %v78_v47 }
 0x13c   :  { %v242_v52 = vpop.eup %241  ;;  %v89_v56 = vmul.f32 %v206_v44, %v79_v49 }
 0x13d   :  { %v80_v53 = vmul.f32 %v242_v52, %v48_v21  ;;  %v98_v55 = vadd.f32 %v207_v50, %v88_v51 }
 0x13e   :  { %v99_v59 = vadd.f32 %v207_v50, %v89_v56 }
 0x13f   :  { %v101_v57 = vpack.c.bf16 %v98_v55, %v97_v54  ;;  %v90_v58 = vmul.f32 %v206_v44, %v80_v53 }
 0x141   :  { %229 = vmatprep.mubr.msk.bf16.mxu0 %vm27_vm0, %v101_v57  ;;  %v100_v60 = vadd.f32 %v207_v50, %v90_v58 }
 0x143   :  { %v102_v61 = vpack.c.bf16 %v100_v60, %v99_v59 }
 0x145   :  { %230 = vmatmul.mubr.msk.bf16.vlgmr.msra.gmra.mrb[0].mxu0 %vm27_vm0, %v102_v61 }
 0x218   :  { %v231_v63 = vpop.f32.mrb[0].mxu0 }
 0x219   :  { %v175_v0 = vadd.f32 %v231_v63, %v208_v62  ;;  %v166_v1 = vpop.f32.mrb[1].mxu0 }
 0x21a   :  { %v167_v2 = vadd.f32 %v208_v62, %v166_v1  ;;  %v232_v3 = vpop.f32.mrb[2].mxu0 }
 0x21b   :  { %v219_v4 = vpack.c.bf16 %v175_v0, %v175_v0  ;;  %v178_v5 = vadd.f32 %v232_v3, %v208_v62  ;;  %v169_v6 = vpop.f32.mrb[3].mxu0 }
 0x21c   :  { %v217_v7 = vpack.c.bf16 %v167_v2, %v167_v2  ;;  %v170_v8 = vadd.f32 %v208_v62, %v169_v6 }
 0x21d   :  { %200 = vst.msk [vmem:[%s327_s5 + $0x8] sm:$0xf] %vm197_vm1, %v219_v4  ;;  %v220_v9 = vpack.c.bf16 %v178_v5, %v178_v5 }
 0x21e   :  { %198 = vst.msk [vmem:[%s327_s5] sm:$0xf] %vm197_vm1, %v217_v7  ;;  %v218_v10 = vpack.c.bf16 %v170_v8, %v170_v8 }
 0x21f   :  { %201 = vst.msk [vmem:[%s327_s5 + $0xc] sm:$0xf] %vm197_vm1, %v220_v9 }
 0x220   :  { %199 = vst.msk [vmem:[%s327_s5 + $0x4] sm:$0xf] %vm197_vm1, %v218_v10 }

// kernel: gpt2_forward.14
= control target key start
LH: loop header
LB: loop body
LE: loop exit
PB: predicated region body
PF: predicated region fallthrough
CT: control target
= control target key end

     0   :  { %vm20_vm0 = vcmask 261120   ;;  %vm110_vm1 = vcmask 257024   ;;  %s199_s0 = inlined_call_operand.vmem [shape: f32[32,32], index: 0, kind: input, shape index: {}]   ;;  %s200_s1 = inlined_call_operand.vmem [shape: f32[1,32], index: 1, kind: input, shape index: {}]   ;;  %s201_s2 = inlined_call_operand.vmem [shape: f32[1,32], index: 2, kind: input, shape index: {}]   ;;  %s202_s3 = inlined_call_operand.vmem [shape: bf16[32,32], index: 3, kind: output, shape index: {}]  }
   0x1   :  { %v14_v0 = vld [vmem:[%s199_s0] sm:$0xff]  ;;  %v16_v1 = vld [vmem:[%s199_s0 + $0x10] sm:$0xff]  ;;  %v15_v2 = vld [vmem:[%s199_s0 + $0x8] sm:$0xff] }
   0x2   :  { %v21_v3 = vsel %vm20_vm0, %v14_v0, 0.0  ;;  %v27_v4 = vsel %vm20_vm0, %v16_v1, 0.0  ;;  %v17_v5 = vld [vmem:[%s199_s0 + $0x18] sm:$0xff]  ;;  %v24_v6 = vsel %vm20_vm0, %v15_v2, 0.0  ;;  %v119_v41 = vld [vmem:[%s200_s1] ss:$0 sm:$0xff] }
   0x3   :  { %22 = vadd.xlane.f32.xlu0 %v21_v3  ;;  %28 = vadd.xlane.f32.xlu1 %v27_v4  ;;  %v30_v7 = vsel %vm20_vm0, %v17_v5, 0.0  ;;  %v120_v43 = vld [vmem:[%s201_s2] ss:$0 sm:$0xff] }
   0x7   :  { %25 = vadd.xlane.f32.xlu0 %v24_v6  ;;  %31 = vadd.xlane.f32.xlu1 %v30_v7 }
  0x90   :  { %v23_v8 = vpop.xlane.xlu0 %22  ;;  %v29_v9 = vpop.xlane.xlu1 %28 }
  0x91   :  { %v34_v10 = vmul.f32 0.03125, %v23_v8  ;;  %v36_v11 = vmul.f32 0.03125, %v29_v9 }
  0x93   :  { %v38_v12 = vsub.f32 %v14_v0, %v34_v10  ;;  %v40_v13 = vsub.f32 %v16_v1, %v36_v11 }
  0x94   :  { %v26_v14 = vpop.xlane.xlu0 %25  ;;  %v32_v15 = vpop.xlane.xlu1 %31 }
  0x95   :  { %v35_v16 = vmul.f32 0.03125, %v26_v14  ;;  %v37_v17 = vmul.f32 0.03125, %v32_v15  ;;  %v42_v18 = vmul.f32 %v38_v12, %v38_v12  ;;  %v44_v19 = vmul.f32 %v40_v13, %v40_v13 }
  0x97   :  { %v39_v20 = vsub.f32 %v15_v2, %v35_v16  ;;  %v41_v21 = vsub.f32 %v17_v5, %v37_v17  ;;  %v46_v22 = vsel %vm20_vm0, %v42_v18, 0.0  ;;  %v52_v23 = vsel %vm20_vm0, %v44_v19, 0.0 }
  0x98   :  { %47 = vadd.xlane.f32.xlu0 %v46_v22 }
  0x99   :  { %v43_v24 = vmul.f32 %v39_v20, %v39_v20  ;;  %v45_v25 = vmul.f32 %v41_v21, %v41_v21 }
  0x9b   :  { %v49_v26 = vsel %vm20_vm0, %v43_v24, 0.0  ;;  %v55_v27 = vsel %vm20_vm0, %v45_v25, 0.0 }
  0x9c   :  { %53 = vadd.xlane.f32.xlu0 %v52_v23  ;;  %50 = vadd.xlane.f32.xlu1 %v49_v26 }
  0xa0   :  { %56 = vadd.xlane.f32.xlu1 %v55_v27 }
 0x125   :  { %v48_v28 = vpop.xlane.xlu0 %47 }
 0x126   :  { %v58_v29 = vmul.f32 0.03125, %v48_v28 }
 0x128   :  { %v62_v30 = vadd.f32 1e-05, %v58_v29 }
 0x129   :  { %v51_v31 = vpop.xlane.xlu1 %50  ;;  %v54_v32 = vpop.xlane.xlu0 %53 }
 0x12a   :  { %129 = vrsqrt.f32 %v62_v30  ;;  %v59_v33 = vmul.f32 0.03125, %v51_v31  ;;  %v60_v34 = vmul.f32 0.03125, %v54_v32 }
 0x12c   :  { %v63_v35 = vadd.f32 1e-05, %v59_v33  ;;  %v64_v36 = vadd.f32 1e-05, %v60_v34 }
 0x12d   :  { %v57_v37 = vpop.xlane.xlu1 %56 }
 0x12e   :  { %131 = vrsqrt.f32 %v63_v35  ;;  %v61_v38 = vmul.f32 0.03125, %v57_v37 }
 0x12f   :  { %133 = vrsqrt.f32 %v64_v36 }
 0x130   :  { %v65_v39 = vadd.f32 1e-05, %v61_v38 }
 0x132   :  { %135 = vrsqrt.f32 %v65_v39 }
 0x134   :  { %v130_v40 = vpop.eup %129 }
 0x135   :  { %v70_v42 = vmul.f32 %v130_v40, %v38_v12 }
 0x137   :  { %v80_v44 = vmul.f32 %v119_v41, %v70_v42 }
 0x138   :  { %v132_v45 = vpop.eup %131 }
 0x139   :  { %v134_v46 = vpop.eup %133  ;;  %v90_v47 = vadd.f32 %v120_v43, %v80_v44  ;;  %v71_v48 = vmul.f32 %v132_v45, %v39_v20 }
 0x13a   :  { %v72_v49 = vmul.f32 %v134_v46, %v40_v13 }
 0x13b   :  { %v125_v50 = vpack.c.bf16 %v90_v47, %v90_v47  ;;  %v81_v51 = vmul.f32 %v119_v41, %v71_v48 }
 0x13c   :  { %v136_v52 = vpop.eup %135  ;;  %v82_v53 = vmul.f32 %v119_v41, %v72_v49 }
 0x13d   :  { %111 = vst.msk [vmem:[%s202_s3] sm:$0xf] %vm110_vm1, %v125_v50  ;;  %v91_v54 = vadd.f32 %v120_v43, %v81_v51  ;;  %v73_v55 = vmul.f32 %v136_v52, %v41_v21 }
 0x13e   :  { %v92_v56 = vadd.f32 %v120_v43, %v82_v53 }
 0x13f   :  { %v126_v57 = vpack.c.bf16 %v91_v54, %v91_v54  ;;  %v83_v58 = vmul.f32 %v119_v41, %v73_v55 }
 0x140   :  { %v127_v59 = vpack.c.bf16 %v92_v56, %v92_v56 }
 0x141   :  { %112 = vst.msk [vmem:[%s202_s3 + $0x4] sm:$0xf] %vm110_vm1, %v126_v57  ;;  %v93_v60 = vadd.f32 %v120_v43, %v83_v58 }
 0x142   :  { %113 = vst.msk [vmem:[%s202_s3 + $0x8] sm:$0xf] %vm110_vm1, %v127_v59 }
 0x143   :  { %v128_v61 = vpack.c.bf16 %v93_v60, %v93_v60 }
 0x145   :  { %114 = vst.msk [vmem:[%s202_s3 + $0xc] sm:$0xf] %vm110_vm1, %v128_v61 }

// kernel: gpt2_forward.10
= control target key start
LH: loop header
LB: loop body
LE: loop exit
PB: predicated region body
PF: predicated region fallthrough
CT: control target
= control target key end

     0   :  { %vm77_vm0 = vcmask 261120   ;;  %s781_s2 = inlined_call_operand.vmem [shape: bf16[32,32], index: 2, kind: input, shape index: {}]   ;;  %s782_s1 = inlined_call_operand.vmem [shape: bf16[32,32], index: 1, kind: input, shape index: {}]   ;;  %s783_s3 = inlined_call_operand.vmem [shape: f32[1,32], index: 3, kind: input, shape index: {}]   ;;  %s784_s0 = inlined_call_operand.vmem [shape: f32[32,32], index: 0, kind: input, shape index: {}, may-alias: {0,10}]   ;;  %s785_s6 = inlined_call_operand.vmem [shape: bf16[32,128], index: 6, kind: input, shape index: {}]   ;;  %s786_s4 = inlined_call_operand.vmem [shape: f32[1,32], index: 4, kind: input, shape index: {}]   ;;  %s787_s5 = inlined_call_operand.vmem [shape: f32[1,32], index: 5, kind: input, shape index: {}]   ;;  %s788_s8 = inlined_call_operand.vmem [shape: bf16[128,32], index: 8, kind: input, shape index: {}]   ;;  %s789_s7 = inlined_call_operand.vmem [shape: f32[1,128], index: 7, kind: input, shape index: {}]   ;;  %s790_s9 = inlined_call_operand.vmem [shape: f32[1,32], index: 9, kind: input, shape index: {}]   ;;  %s791_s10 = inlined_call_operand.vmem [shape: f32[32,32], index: 10, kind: output, shape index: {}, may-alias: {0,10}]  }
   0x1   :  { %v584_v0 = vld [vmem:[%s781_s2] sm:$0xff]   ;;  %v585_v1 = vld [vmem:[%s781_s2 + $0x8] sm:$0xff]   ;;  %v135_v6 = vld [vmem:[%s784_s0 + $0x10] sm:$0xff] }
   0x2   :  { %547 = vmatprep.subr.bf16.mxu1 %v584_v0  ;;  %v586_v2 = vld [vmem:[%s782_s1] sm:$0xff]   ;;  %v587_v3 = vld [vmem:[%s782_s1 + $0x8] sm:$0xff]   ;;  %v136_v12 = vld [vmem:[%s784_s0 + $0x18] sm:$0xff] }
   0x3   :  { %548 = vmatpush3.bf16.msra.mxu1 %v584_v0  ;;  %551 = vmatprep.mubr.msk.bf16.mxu1 %vm77_vm0, %v586_v2  ;;  %v506_v4 = vld [vmem:[%s783_s3] ss:$0 sm:$0xff]  ;;  %v134_v16 = vld [vmem:[%s784_s0 + $0x8] sm:$0xff] }
   0x4   :  { %549 = vmatprep.subr.bf16.mxu1 %v585_v1  ;;  %v133_v9 = vld [vmem:[%s784_s0] sm:$0xff]  ;;  %v589_v46 = vld [vmem:[%s785_s6 + $0x8] sm:$0xff]  }
   0x5   :  { %v588_v45 = vld [vmem:[%s785_s6] sm:$0xff]  }
   0x6   :  { %v513_v61 = vld [vmem:[%s786_s4] ss:$0 sm:$0xff] }
   0x7   :  { %550 = vmatpush3.bf16.msra.mxu1 %v585_v1  ;;  %v514_v2 = vld [vmem:[%s787_s5] ss:$0 sm:$0xff] }
   0x8   :  { %555 = vmatprep.subr.bf16.mxu1 %v588_v45 }
   0xa   :  { %552 = vmatmul.mubr.msk.bf16.vlgmr.msra.gmra.mrb[0].mxu1 %vm77_vm0, %v587_v3 }
   0xb   :  { %556 = vmatpush3.bf16.msra.mxu1 %v588_v45 }
   0xc   :  { %557 = vmatprep.subr.bf16.mxu1 %v589_v46 }
   0xf   :  { %558 = vmatpush3.bf16.msra.mxu1 %v589_v46 }
  0xdd   :  { %v553_v5 = vpop.f32.mrb[0].mxu1 }
  0xde   :  { %v127_v7 = vadd.f32 %v553_v5, %v506_v4  ;;  %v118_v8 = vpop.f32.mrb[1].mxu1 }
  0xdf   :  { %v119_v10 = vadd.f32 %v506_v4, %v118_v8  ;;  %v554_v11 = vpop.f32.mrb[2].mxu1 }
  0xe0   :  { %v139_v13 = vadd.f32 %v135_v6, %v127_v7  ;;  %v130_v14 = vadd.f32 %v554_v11, %v506_v4  ;;  %v121_v15 = vpop.f32.mrb[3].mxu1 }
  0xe1   :  { %v137_v17 = vadd.f32 %v133_v9, %v119_v10  ;;  %v122_v18 = vadd.f32 %v506_v4, %v121_v15 }
  0xe2   :  { %143 = vst.msk [vmem:[#allocation2 + $0x10] sm:$0xff] %vm77_vm0, %v139_v13  ;;  %v140_v19 = vadd.f32 %v136_v12, %v130_v14  ;;  %v153_v20 = vsel %vm77_vm0, %v139_v13, 0.0 }
  0xe3   :  { %141 = vst.msk [vmem:[#allocation2] sm:$0xff] %vm77_vm0, %v137_v17  ;;  %v138_v21 = vadd.f32 %v134_v16, %v122_v18  ;;  %154 = vadd.xlane.f32.xlu1 %v153_v20  ;;  %v147_v22 = vsel %vm77_vm0, %v137_v17, 0.0  ;;  %v591_v18 = vld [vmem:[%s788_s8 + $0x8] sm:$0xff]   ;;  %v593_v20 = vld [vmem:[%s788_s8 + $0x18] sm:$0xff]  }
  0xe4   :  { %144 = vst.msk [vmem:[#allocation2 + $0x18] sm:$0xff] %vm77_vm0, %v140_v19  ;;  %148 = vadd.xlane.f32.xlu0 %v147_v22  ;;  %v156_v23 = vsel %vm77_vm0, %v140_v19, 0.0  ;;  %v595_v22 = vld [vmem:[%s788_s8 + $0x28] sm:$0xff]  }
  0xe5   :  { %142 = vst.msk [vmem:[#allocation2 + $0x8] sm:$0xff] %vm77_vm0, %v138_v21  ;;  %v150_v24 = vsel %vm77_vm0, %v138_v21, 0.0 }
  0xe7   :  { %157 = vadd.xlane.f32.xlu1 %v156_v23  ;;  %v596_v23 = vld [vmem:[%s788_s8 + $0x30] sm:$0xff]  }
  0xe8   :  { %151 = vadd.xlane.f32.xlu0 %v150_v24  ;;  %v597_v24 = vld [vmem:[%s788_s8 + $0x38] sm:$0xff]  }
 0x170   :  { %v155_v25 = vpop.xlane.xlu1 %154 }
 0x171   :  { %v162_v26 = vmul.f32 0.03125, %v155_v25  ;;  %v149_v27 = vpop.xlane.xlu0 %148  ;;  %v614_v25 = vmov 0.0  }
 0x172   :  { %v160_v28 = vmul.f32 0.03125, %v149_v27  ;;  %226 = vst.msk [vmem:[#allocation4 + $0x10] sm:$0xff] %vm77_vm0, %v614_v25  ;;  %224 = vst.msk [vmem:[#allocation4] sm:$0xff] %vm77_vm0, %v614_v25 }
 0x173   :  { %v166_v29 = vsub.f32 %v139_v13, %v162_v26  ;;  %225 = vst.msk [vmem:[#allocation4 + $0x8] sm:$0xff] %vm77_vm0, %v614_v25  ;;  %227 = vst.msk [vmem:[#allocation4 + $0x18] sm:$0xff] %vm77_vm0, %v614_v25  ;;  %v515_v26 = vld [vmem:[%s789_s7] ss:$0 sm:$0xff] }
 0x174   :  { %v164_v30 = vsub.f32 %v137_v17, %v160_v28  ;;  %v158_v31 = vpop.xlane.xlu1 %157  ;;  %v590_v17 = vld [vmem:[%s788_s8] sm:$0xff]  }
 0x175   :  { %v163_v32 = vmul.f32 0.03125, %v158_v31  ;;  %v152_v33 = vpop.xlane.xlu0 %151  ;;  %v170_v39 = vmul.f32 %v166_v29, %v166_v29  ;;  %563 = vmatprep.subr.bf16.mxu0 %v590_v17 }
 0x176   :  { %v161_v34 = vmul.f32 0.03125, %v152_v33  ;;  %v168_v35 = vmul.f32 %v164_v30, %v164_v30  ;;  %564 = vmatpush3.bf16.msra.mxu0 %v590_v17 }
 0x177   :  { %v167_v36 = vsub.f32 %v140_v19, %v163_v32  ;;  %v178_v41 = vsel %vm77_vm0, %v170_v39, 0.0  ;;  %565 = vmatprep.subr.bf16.mxu0 %v591_v18  ;;  %v592_v19 = vld [vmem:[%s788_s8 + $0x10] sm:$0xff]  }
 0x178   :  { %v165_v37 = vsub.f32 %v138_v21, %v161_v34  ;;  %v172_v38 = vsel %vm77_vm0, %v168_v35, 0.0  ;;  %v594_v21 = vld [vmem:[%s788_s8 + $0x20] sm:$0xff]  }
 0x179   :  { %173 = vadd.xlane.f32.xlu0 %v172_v38  ;;  %v171_v43 = vmul.f32 %v167_v36, %v167_v36 }
 0x17a   :  { %v169_v40 = vmul.f32 %v165_v37, %v165_v37  ;;  %566 = vmatpush3.bf16.msra.mxu0 %v591_v18 }
 0x17b   :  { %v181_v44 = vsel %vm77_vm0, %v171_v43, 0.0  ;;  %567 = vmatprep.subr.bf16.mxu0 %v592_v19 }
 0x17c   :  { %v175_v42 = vsel %vm77_vm0, %v169_v40, 0.0 }
 0x17d   :  { %179 = vadd.xlane.f32.xlu0 %v178_v41  ;;  %176 = vadd.xlane.f32.xlu1 %v175_v42 }
 0x17e   :  { %568 = vmatpush3.bf16.msra.mxu0 %v592_v19 }
 0x17f   :  { %569 = vmatprep.subr.bf16.mxu0 %v593_v20 }
 0x181   :  { %182 = vadd.xlane.f32.xlu1 %v181_v44 }
 0x182   :  { %570 = vmatpush3.bf16.msra.mxu0 %v593_v20 }
 0x183   :  { %571 = vmatprep.subr.bf16.mxu0 %v594_v21 }
 0x186   :  { %572 = vmatpush3.bf16.msra.mxu0 %v594_v21  ;;  %v477_v21 = vld [vmem:[#allocation2 + $0x10] sm:$0xff] }
 0x187   :  { %573 = vmatprep.subr.bf16.mxu0 %v595_v22 }
 0x18a   :  { %574 = vmatpush3.bf16.msra.mxu0 %v595_v22 }
 0x18b   :  { %575 = vmatprep.subr.bf16.mxu0 %v596_v23 }
 0x18e   :  { %576 = vmatpush3.bf16.msra.mxu0 %v596_v23  ;;  %v528_v23 = vld [vmem:[%s790_s9] ss:$0 sm:$0xff] }
 0x18f   :  { %577 = vmatprep.subr.bf16.mxu0 %v597_v24 }
 0x192   :  { %578 = vmatpush3.bf16.msra.mxu0 %v597_v24  ;;  %v475_v24 = vld [vmem:[#allocation2] sm:$0xff] }
 0x206   :  { %v174_v47 = vpop.xlane.xlu0 %173 }
 0x207   :  { %v184_v48 = vmul.f32 0.03125, %v174_v47 }
 0x209   :  { %v188_v49 = vadd.f32 1e-05, %v184_v48 }
 0x20a   :  { %v177_v50 = vpop.xlane.xlu1 %176  ;;  %v180_v51 = vpop.xlane.xlu0 %179 }
 0x20b   :  { %598 = vrsqrt.f32 %v188_v49  ;;  %v185_v52 = vmul.f32 0.03125, %v177_v50  ;;  %v186_v53 = vmul.f32 0.03125, %v180_v51 }
 0x20d   :  { %v189_v54 = vadd.f32 1e-05, %v185_v52  ;;  %v190_v55 = vadd.f32 1e-05, %v186_v53 }
 0x20e   :  { %v183_v56 = vpop.xlane.xlu1 %182 }
 0x20f   :  { %600 = vrsqrt.f32 %v189_v54  ;;  %v187_v57 = vmul.f32 0.03125, %v183_v56 }
 0x210   :  { %602 = vrsqrt.f32 %v190_v55 }
 0x211   :  { %v191_v58 = vadd.f32 1e-05, %v187_v57 }
 0x213   :  { %604 = vrsqrt.f32 %v191_v58 }
 0x215   :  { %v599_v59 = vpop.eup %598 }
 0x216   :  { %v196_v60 = vmul.f32 %v599_v59, %v164_v30 }
 0x218   :  { %v206_v0 = vmul.f32 %v513_v61, %v196_v60 }
 0x219   :  { %v601_v62 = vpop.eup %600 }
 0x21a   :  { %v603_v63 = vpop.eup %602  ;;  %v197_v1 = vmul.f32 %v601_v62, %v165_v37  ;;  %v216_v6 = vadd.f32 %v514_v2, %v206_v0 }
 0x21b   :  { %v198_v3 = vmul.f32 %v603_v63, %v166_v29 }
 0x21c   :  { %v207_v4 = vmul.f32 %v513_v61, %v197_v1 }
 0x21d   :  { %v605_v5 = vpop.eup %604  ;;  %v208_v8 = vmul.f32 %v513_v61, %v198_v3 }
 0x21e   :  { %v217_v7 = vadd.f32 %v514_v2, %v207_v4  ;;  %v199_v9 = vmul.f32 %v605_v5, %v167_v36 }
 0x21f   :  { %v218_v12 = vadd.f32 %v514_v2, %v208_v8 }
 0x220   :  { %v220_v10 = vpack.c.bf16 %v217_v7, %v216_v6  ;;  %v209_v11 = vmul.f32 %v513_v61, %v199_v9  ;;  %v347_v9 = vld [vmem:[#allocation4 + $0x10] sm:$0xff] }
 0x222   :  { %222 = vst.msk [vmem:[#allocation3] sm:$0xff] %vm77_vm0, %v220_v10  ;;  %v219_v13 = vadd.f32 %v514_v2, %v209_v11  ;;  %v345_v10 = vld [vmem:[#allocation4] sm:$0xff] }
 0x224   :  { %v221_v14 = vpack.c.bf16 %v219_v13, %v218_v12  ;;  %v348_v12 = vld [vmem:[#allocation4 + $0x18] sm:$0xff] }
 0x226   :  { %223 = vst.msk [vmem:[#allocation3 + $0x8] sm:$0xff] %vm77_vm0, %v221_v14 }
 0x229   :  { %v228_v15 = vld [vmem:[#allocation3] sm:$0xff] }
 0x22a   :  { %559 = vmatprep.mubr.msk.bf16.mxu1 %vm77_vm0, %v228_v15  ;;  %v346_v15 = vld [vmem:[#allocation4 + $0x8] sm:$0xff] }
 0x22d   :  { %v229_v16 = vld [vmem:[#allocation3 + $0x8] sm:$0xff] }
 0x22e   :  { %560 = vmatmul.mubr.msk.bf16.vlgmr.msra.gmra.mrb[4].mxu1 %vm77_vm0, %v229_v16 }
 0x301   :  { %v561_v27 = vpop.f32.mrb[4].mxu1 }
 0x302   :  { %v303_v28 = vadd.f32 %v561_v27, %v515_v26  ;;  %v294_v29 = vpop.f32.mrb[5].mxu1  ;;  %v478_v27 = vld [vmem:[#allocation2 + $0x18] sm:$0xff] }
 0x303   :  { %v295_v30 = vadd.f32 %v515_v26, %v294_v29  ;;  %v562_v31 = vpop.f32.mrb[6].mxu1 }
 0x304   :  { %v315_v32 = vmul.f32 0.044715, %v303_v28  ;;  %v306_v33 = vadd.f32 %v562_v31, %v515_v26  ;;  %v297_v34 = vpop.f32.mrb[7].mxu1  ;;  %v311_v61 = vmul.f32 0.5, %v303_v28 }
 0x305   :  { %v313_v35 = vmul.f32 0.044715, %v295_v30  ;;  %v298_v36 = vadd.f32 %v515_v26, %v297_v34  ;;  %v309_v0 = vmul.f32 0.5, %v295_v30 }
 0x306   :  { %v319_v37 = vmul.f32 %v315_v32, %v303_v28  ;;  %v316_v38 = vmul.f32 0.044715, %v306_v33  ;;  %v312_v62 = vmul.f32 0.5, %v306_v33 }
 0x307   :  { %v314_v39 = vmul.f32 0.044715, %v298_v36  ;;  %v317_v40 = vmul.f32 %v313_v35, %v295_v30  ;;  %v310_v1 = vmul.f32 0.5, %v298_v36 }
 0x308   :  { %v323_v41 = vmul.f32 %v319_v37, %v303_v28  ;;  %v320_v42 = vmul.f32 %v316_v38, %v306_v33 }
 0x309   :  { %v318_v43 = vmul.f32 %v314_v39, %v298_v36  ;;  %v321_v44 = vmul.f32 %v317_v40, %v295_v30 }
 0x30a   :  { %v324_v45 = vmul.f32 %v320_v42, %v306_v33  ;;  %v327_v46 = vadd.f32 %v323_v41, %v303_v28 }
 0x30b   :  { %v322_v47 = vmul.f32 %v318_v43, %v298_v36  ;;  %v325_v48 = vadd.f32 %v321_v44, %v295_v30  ;;  %v476_v30 = vld [vmem:[#allocation2 + $0x8] sm:$0xff] }
 0x30c   :  { %v328_v49 = vadd.f32 %v324_v45, %v306_v33  ;;  %v331_v50 = vmul.f32 0.7978846, %v327_v46 }
 0x30d   :  { %v326_v51 = vadd.f32 %v322_v47, %v298_v36  ;;  %v329_v52 = vmul.f32 0.7978846, %v325_v48 }
 0x30e   :  { %v332_v53 = vmul.f32 0.7978846, %v328_v49  ;;  %606 = vtanh.f32 %v331_v50 }
 0x30f   :  { %v330_v54 = vmul.f32 0.7978846, %v326_v51  ;;  %608 = vtanh.f32 %v329_v52 }
 0x310   :  { %610 = vtanh.f32 %v332_v53 }
 0x311   :  { %612 = vtanh.f32 %v330_v54 }
 0x318   :  { %v607_v55 = vpop.eup %606 }
 0x319   :  { %v609_v56 = vpop.eup %608  ;;  %v339_v57 = vadd.f32 1.0, %v607_v55 }
 0x31a   :  { %v611_v58 = vpop.eup %610  ;;  %v337_v59 = vadd.f32 1.0, %v609_v56 }
 0x31b   :  { %v613_v60 = vpop.eup %612  ;;  %v340_v63 = vadd.f32 1.0, %v611_v58  ;;  %v343_v3 = vmul.f32 %v339_v57, %v311_v61 }
 0x31c   :  { %v338_v2 = vadd.f32 1.0, %v613_v60  ;;  %v341_v5 = vmul.f32 %v337_v59, %v309_v0 }
 0x31d   :  { %v344_v4 = vmul.f32 %v340_v63, %v312_v62 }
 0x31e   :  { %v342_v6 = vmul.f32 %v338_v2, %v310_v1 }
 0x31f   :  { %v350_v7 = vpack.c.bf16 %v344_v4, %v343_v3 }
 0x320   :  { %v349_v8 = vpack.c.bf16 %v342_v6, %v341_v5 }
 0x322   :  { %579 = vmatprep.mubr.bf16.mxu0 %v349_v8 }
 0x323   :  { %580 = vmatmul.mubr.bf16.vlgmr.msra.gmra.mrb[0].mxu0 %v350_v7 }
 0x3f6   :  { %v581_v11 = vpop.f32.mrb[0].mxu0 }
 0x3f7   :  { %v466_v13 = vadd.f32 %v581_v11, %v347_v9  ;;  %v449_v14 = vpop.f32.mrb[1].mxu0 }
 0x3f8   :  { %v464_v16 = vadd.f32 %v449_v14, %v345_v10  ;;  %v582_v17 = vpop.f32.mrb[2].mxu0 }
 0x3f9   :  { %470 = vst.msk [vmem:[#allocation4 + $0x10] sm:$0xff] %vm77_vm0, %v466_v13  ;;  %v467_v18 = vadd.f32 %v582_v17, %v348_v12  ;;  %v452_v19 = vpop.f32.mrb[3].mxu0 }
 0x3fa   :  { %468 = vst.msk [vmem:[#allocation4] sm:$0xff] %vm77_vm0, %v464_v16  ;;  %v465_v20 = vadd.f32 %v452_v19, %v346_v15 }
 0x3fb   :  { %471 = vst.msk [vmem:[#allocation4 + $0x18] sm:$0xff] %vm77_vm0, %v467_v18 }
 0x3fc   :  { %469 = vst.msk [vmem:[#allocation4 + $0x8] sm:$0xff] %vm77_vm0, %v465_v20 }
 0x400   :  { %v481_v22 = vld [vmem:[#allocation4 + $0x10] sm:$0xff] }
 0x401   :  { %v485_v25 = vadd.f32 %v481_v22, %v477_v21  ;;  %v479_v26 = vld [vmem:[#allocation4] sm:$0xff] }
 0x402   :  { %v483_v28 = vadd.f32 %v479_v26, %v475_v24  ;;  %v482_v29 = vld [vmem:[#allocation4 + $0x18] sm:$0xff] }
 0x403   :  { %v496_v31 = vadd.f32 %v528_v23, %v485_v25  ;;  %v486_v32 = vadd.f32 %v482_v29, %v478_v27  ;;  %v480_v33 = vld [vmem:[#allocation4 + $0x8] sm:$0xff] }
 0x404   :  { %v494_v34 = vadd.f32 %v528_v23, %v483_v28  ;;  %v484_v35 = vadd.f32 %v480_v33, %v476_v30 }
 0x405   :  { %500 = vst.msk [vmem:[%s791_s10 + $0x10] sm:$0xff] %vm77_vm0, %v496_v31  ;;  %v497_v36 = vadd.f32 %v528_v23, %v486_v32 }
 0x406   :  { %498 = vst.msk [vmem:[%s791_s10] sm:$0xff] %vm77_vm0, %v494_v34  ;;  %v495_v37 = vadd.f32 %v528_v23, %v484_v35 }
 0x407   :  { %501 = vst.msk [vmem:[%s791_s10 + $0x18] sm:$0xff] %vm77_vm0, %v497_v36 }
 0x408   :  { %499 = vst.msk [vmem:[%s791_s10 + $0x8] sm:$0xff] %vm77_vm0, %v495_v37 }

// kernel: gpt2_forward.15
= control target key start
LH: loop header
LB: loop body
LE: loop exit
PB: predicated region body
PF: predicated region fallthrough
CT: control target
= control target key end

     0   :  { %vm42_vm0 = vcmask 261120   ;;  %s196_s1 = inlined_call_operand.vmem [shape: bf16[32,128], index: 1, kind: input, shape index: {}]   ;;  %s197_s0 = inlined_call_operand.vmem [shape: bf16[32,32], index: 0, kind: input, shape index: {}]   ;;  %s198_s2 = inlined_call_operand.vmem [shape: bf16[32,128], index: 2, kind: output, shape index: {}]  }
   0x1   :  { %v159_v0 = vld [vmem:[%s196_s1] sm:$0xff]   ;;  %v160_v1 = vld [vmem:[%s196_s1 + $0x8] sm:$0xff]  }
   0x2   :  { %151 = vmatprep.subr.bf16.mxu0 %v159_v0  ;;  %v161_v2 = vld [vmem:[%s197_s0] sm:$0xff]   ;;  %v162_v3 = vld [vmem:[%s197_s0 + $0x8] sm:$0xff]  }
   0x3   :  { %152 = vmatpush3.bf16.msra.mxu0 %v159_v0  ;;  %155 = vmatprep.mubr.msk.bf16.mxu0 %vm42_vm0, %v161_v2 }
   0x4   :  { %153 = vmatprep.subr.bf16.mxu0 %v160_v1 }
   0x7   :  { %154 = vmatpush3.bf16.msra.mxu0 %v160_v1 }
   0xa   :  { %156 = vmatmul.mubr.msk.bf16.vlgmr.msra.gmra.mrb[0].mxu0 %vm42_vm0, %v162_v3 }
  0xdd   :  { %v157_v4 = vpop.f32.mrb[0].mxu0 }
  0xde   :  { %v83_v5 = vpop.f32.mrb[1].mxu0 }
  0xdf   :  { %v158_v6 = vpop.f32.mrb[2].mxu0 }
  0xe0   :  { %v144_v7 = vpack.c.bf16 %v158_v6, %v157_v4  ;;  %v86_v8 = vpop.f32.mrb[3].mxu0 }
  0xe1   :  { %v139_v9 = vpack.c.bf16 %v86_v8, %v83_v5 }
  0xe2   :  { %146 = vst [vmem:[%s198_s2 + $0x8] sm:$0xff] %v144_v7  }
  0xe3   :  { %140 = vst [vmem:[%s198_s2] sm:$0xff] %v139_v9  }

// kernel: gpt2_forward.9
= control target key start
LH: loop header
LB: loop body
LE: loop exit
PB: predicated region body
PF: predicated region fallthrough
CT: control target
= control target key end

     0   :  { %vm52_vm0 = vcmask 64512   ;;  %v3600_v0 = vmov 0.0   ;;  %vm3601_vm1 = vmmov 0   ;;  %vm19_vm2 = vcmask 7168   ;;  %s4332_s1 = inlined_call_operand.vmem [shape: bf16[8,16,8], index: 1, kind: input, shape index: {}]   ;;  %s4333_s0 = inlined_call_operand.vmem [shape: bf16[8,16,8], index: 0, kind: input, shape index: {}]   ;;  %s4334_s2 = inlined_call_operand.vmem [shape: bf16[8,16,8], index: 2, kind: input, shape index: {}]   ;;  %s4335_s3 = inlined_call_operand.vmem [shape: bf16[8,16,8], index: 3, kind: output, shape index: {}]  }
   0x1   :  { %3378 = vmatprep.subr.bf16.mxu0 %v3600_v0  ;;  %3384 = vmatprep.subr.bf16.mxu1 %v3600_v0  ;;  %v3480_v1 = vld [vmem:[%s4332_s1] sm:$0xff]   ;;  %53 = vst.msk [vmem:[#allocation4] sm:$0xff] %vm52_vm0, %v3600_v0  ;;  %54 = vst.msk [vmem:[#allocation4 + $0x8] sm:$0xff] %vm52_vm0, %v3600_v0  ;;  %v3481_v2 = vld [vmem:[%s4332_s1 + $0x8] sm:$0xff]   ;;  %v3602_v25 = vmov -1e+30   ;;  %v584_v26 = vlaneseq }
   0x2   :  { %55 = vst.msk [vmem:[#allocation4 + $0x10] sm:$0xff] %vm52_vm0, %v3600_v0  ;;  %56 = vst.msk [vmem:[#allocation4 + $0x18] sm:$0xff] %vm52_vm0, %v3600_v0  ;;  %3380 = vmatprep.mubr.msk.bf16.mxu0 %vm3601_vm1, %v3600_v0  ;;  %3386 = vmatprep.mubr.msk.bf16.mxu1 %vm3601_vm1, %v3600_v0  ;;  %v142_v3 = vsel %vm52_vm0, %v3480_v1, 0  ;;  %v199_v4 = vsel %vm52_vm0, %v3481_v2, 0  ;;  %v3484_v5 = vld [vmem:[%s4332_s1 + $0x10] sm:$0xff]   ;;  %v3485_v6 = vld [vmem:[%s4332_s1 + $0x18] sm:$0xff]  }
   0x3   :  { %57 = vst.msk [vmem:[#allocation4 + $0x20] sm:$0xff] %vm52_vm0, %v3600_v0  ;;  %58 = vst.msk [vmem:[#allocation4 + $0x28] sm:$0xff] %vm52_vm0, %v3600_v0  ;;  %3379 = vmatpush3.bf16.xpose.msra.mxu0 %v142_v3  ;;  %3385 = vmatpush3.bf16.xpose.msra.mxu1 %v199_v4  ;;  %v3482_v7 = vld [vmem:[%s4333_s0] sm:$0xff]   ;;  %v3483_v8 = vld [vmem:[%s4333_s0 + $0x8] sm:$0xff]   ;;  %v256_v9 = vsel %vm52_vm0, %v3484_v5, 0  ;;  %v313_v10 = vsel %vm52_vm0, %v3485_v6, 0 }
   0x4   :  { %59 = vst.msk [vmem:[#allocation4 + $0x30] sm:$0xff] %vm52_vm0, %v3600_v0  ;;  %60 = vst.msk [vmem:[#allocation4 + $0x38] sm:$0xff] %vm52_vm0, %v3600_v0  ;;  %3390 = vmatprep.subr.bf16.mxu0 %v3600_v0  ;;  %3396 = vmatprep.subr.bf16.mxu1 %v3600_v0  ;;  %v3487_v11 = vld [vmem:[%s4332_s1 + $0x20] sm:$0xff]   ;;  %v3489_v12 = vld [vmem:[%s4332_s1 + $0x28] sm:$0xff]   ;;  %v585_v27 = vshrl.u32 %v584_v26, 7  ;;  %v591_v28 = vand.u32 127, %v584_v26 }
   0x5   :  { %61 = vst.msk [vmem:[#allocation4 + $0x40] sm:$0xff] %vm52_vm0, %v3600_v0  ;;  %62 = vst.msk [vmem:[#allocation4 + $0x48] sm:$0xff] %vm52_vm0, %v3600_v0  ;;  %v3486_v13 = vld [vmem:[%s4333_s0 + $0x10] sm:$0xff]   ;;  %v3488_v14 = vld [vmem:[%s4333_s0 + $0x18] sm:$0xff]   ;;  %v370_v15 = vsel %vm52_vm0, %v3487_v11, 0  ;;  %v427_v16 = vsel %vm52_vm0, %v3489_v12, 0 }
   0x6   :  { %63 = vst.msk [vmem:[#allocation4 + $0x50] sm:$0xff] %vm52_vm0, %v3600_v0  ;;  %64 = vst.msk [vmem:[#allocation4 + $0x58] sm:$0xff] %vm52_vm0, %v3600_v0  ;;  %v3491_v17 = vld [vmem:[%s4332_s1 + $0x30] sm:$0xff]   ;;  %v3493_v18 = vld [vmem:[%s4332_s1 + $0x38] sm:$0xff]   ;;  %v586_v29 = vadd.s32 8, %v585_v27  ;;  %vm3798_vm3 = vcmp.ge.s32.totalorder %v585_v27, %v591_v28  ;;  %vm632_vm4 = vcmask 130048  }
   0x7   :  { %65 = vst.msk [vmem:[#allocation4 + $0x60] sm:$0xff] %vm52_vm0, %v3600_v0  ;;  %66 = vst.msk [vmem:[#allocation4 + $0x68] sm:$0xff] %vm52_vm0, %v3600_v0  ;;  %v3490_v19 = vld [vmem:[%s4333_s0 + $0x20] sm:$0xff]   ;;  %v3492_v20 = vld [vmem:[%s4333_s0 + $0x28] sm:$0xff]   ;;  %v484_v21 = vsel %vm52_vm0, %v3491_v17, 0  ;;  %v541_v22 = vsel %vm52_vm0, %v3493_v18, 0 }
   0x8   :  { %67 = vst.msk [vmem:[#allocation4 + $0x70] sm:$0xff] %vm52_vm0, %v3600_v0  ;;  %68 = vst.msk [vmem:[#allocation4 + $0x78] sm:$0xff] %vm52_vm0, %v3600_v0  ;;  %v3494_v23 = vld [vmem:[%s4333_s0 + $0x30] sm:$0xff]   ;;  %v3495_v24 = vld [vmem:[%s4333_s0 + $0x38] sm:$0xff]   ;;  %vm3802_vm5 = vcmp.ge.s32.totalorder %v586_v29, %v591_v28  ;;  %v3603_v12 = vmov 0   ;;  %vm3213_vm6 = vcmask 60416  }
   0x9   :  { %22 = vst.msk [vmem:[#allocation2 + $0x10] sm:$0xff] %vm19_vm2, %v3602_v25  ;;  %20 = vst.msk [vmem:[#allocation2] sm:$0xff] %vm19_vm2, %v3602_v25  ;;  %3479 = vset.pattern.permute.xlu1 %v3603_v12  ;;  %3478 = vset.pattern.permute.xlu0 %v3603_v12 }
   0xa   :  { %3381 = vmatmul.mubr.msk.bf16.vlgmr.msra.gmra.mrb[0].mxu0 %vm52_vm0, %v3482_v7  ;;  %3387 = vmatmul.mubr.msk.bf16.vlgmr.msra.gmra.mrb[0].mxu1 %vm52_vm0, %v3483_v8  ;;  %21 = vst.msk [vmem:[#allocation2 + $0x8] sm:$0xff] %vm19_vm2, %v3602_v25  ;;  %23 = vst.msk [vmem:[#allocation2 + $0x18] sm:$0xff] %vm19_vm2, %v3602_v25 }
   0xb   :  { %3391 = vmatpush3.bf16.xpose.msra.mxu0 %v256_v9  ;;  %3397 = vmatpush3.bf16.xpose.msra.mxu1 %v313_v10  ;;  %24 = vst.msk [vmem:[#allocation2 + $0x20] sm:$0xff] %vm19_vm2, %v3602_v25  ;;  %25 = vst.msk [vmem:[#allocation2 + $0x28] sm:$0xff] %vm19_vm2, %v3602_v25 }
   0xc   :  { %3392 = vmatprep.mubr.msk.bf16.mxu0 %vm3601_vm1, %v3600_v0  ;;  %3402 = vmatprep.subr.bf16.mxu0 %v3600_v0  ;;  %26 = vst.msk [vmem:[#allocation2 + $0x30] sm:$0xff] %vm19_vm2, %v3602_v25  ;;  %27 = vst.msk [vmem:[#allocation2 + $0x38] sm:$0xff] %vm19_vm2, %v3602_v25 }
   0xd   :  { %3398 = vmatprep.mubr.msk.bf16.mxu1 %vm3601_vm1, %v3600_v0  ;;  %3408 = vmatprep.subr.bf16.mxu1 %v3600_v0  ;;  %28 = vst.msk [vmem:[#allocation2 + $0x40] sm:$0xff] %vm19_vm2, %v3602_v25  ;;  %29 = vst.msk [vmem:[#allocation2 + $0x48] sm:$0xff] %vm19_vm2, %v3602_v25 }
   0xe   :  { %30 = vst.msk [vmem:[#allocation2 + $0x50] sm:$0xff] %vm19_vm2, %v3602_v25  ;;  %31 = vst.msk [vmem:[#allocation2 + $0x58] sm:$0xff] %vm19_vm2, %v3602_v25 }
   0xf   :  { %32 = vst.msk [vmem:[#allocation2 + $0x60] sm:$0xff] %vm19_vm2, %v3602_v25  ;;  %33 = vst.msk [vmem:[#allocation2 + $0x68] sm:$0xff] %vm19_vm2, %v3602_v25 }
  0x10   :  { %34 = vst.msk [vmem:[#allocation2 + $0x70] sm:$0xff] %vm19_vm2, %v3602_v25  ;;  %35 = vst.msk [vmem:[#allocation2 + $0x78] sm:$0xff] %vm19_vm2, %v3602_v25 }
  0x11   :  { %36 = vst.msk [vmem:[#allocation3] sm:$0xff] %vm19_vm2, %v3600_v0  ;;  %37 = vst.msk [vmem:[#allocation3 + $0x8] sm:$0xff] %vm19_vm2, %v3600_v0 }
  0x12   :  { %3393 = vmatmul.mubr.msk.bf16.vlgmr.msra.gmra.mrb[4].mxu0 %vm52_vm0, %v3486_v13  ;;  %3399 = vmatmul.mubr.msk.bf16.vlgmr.msra.gmra.mrb[4].mxu1 %vm52_vm0, %v3488_v14  ;;  %38 = vst.msk [vmem:[#allocation3 + $0x10] sm:$0xff] %vm19_vm2, %v3600_v0  ;;  %39 = vst.msk [vmem:[#allocation3 + $0x18] sm:$0xff] %vm19_vm2, %v3600_v0 }
  0x13   :  { %3403 = vmatpush3.bf16.xpose.msra.mxu0 %v370_v15  ;;  %3409 = vmatpush3.bf16.xpose.msra.mxu1 %v427_v16  ;;  %40 = vst.msk [vmem:[#allocation3 + $0x20] sm:$0xff] %vm19_vm2, %v3600_v0  ;;  %41 = vst.msk [vmem:[#allocation3 + $0x28] sm:$0xff] %vm19_vm2, %v3600_v0 }
  0x14   :  { %3404 = vmatprep.mubr.msk.bf16.mxu0 %vm3601_vm1, %v3600_v0  ;;  %3414 = vmatprep.subr.bf16.mxu0 %v3600_v0  ;;  %42 = vst.msk [vmem:[#allocation3 + $0x30] sm:$0xff] %vm19_vm2, %v3600_v0  ;;  %43 = vst.msk [vmem:[#allocation3 + $0x38] sm:$0xff] %vm19_vm2, %v3600_v0 }
  0x15   :  { %3410 = vmatprep.mubr.msk.bf16.mxu1 %vm3601_vm1, %v3600_v0  ;;  %3420 = vmatprep.subr.bf16.mxu1 %v3600_v0  ;;  %44 = vst.msk [vmem:[#allocation3 + $0x40] sm:$0xff] %vm19_vm2, %v3600_v0  ;;  %45 = vst.msk [vmem:[#allocation3 + $0x48] sm:$0xff] %vm19_vm2, %v3600_v0 }
  0x16   :  { %46 = vst.msk [vmem:[#allocation3 + $0x50] sm:$0xff] %vm19_vm2, %v3600_v0  ;;  %47 = vst.msk [vmem:[#allocation3 + $0x58] sm:$0xff] %vm19_vm2, %v3600_v0 }
  0x17   :  { %48 = vst.msk [vmem:[#allocation3 + $0x60] sm:$0xff] %vm19_vm2, %v3600_v0  ;;  %49 = vst.msk [vmem:[#allocation3 + $0x68] sm:$0xff] %vm19_vm2, %v3600_v0 }
  0x18   :  { %50 = vst.msk [vmem:[#allocation3 + $0x70] sm:$0xff] %vm19_vm2, %v3600_v0  ;;  %51 = vst.msk [vmem:[#allocation3 + $0x78] sm:$0xff] %vm19_vm2, %v3600_v0 }
  0x1a   :  { %3405 = vmatmul.mubr.msk.bf16.vlgmr.msra.gmra.mrb[8].mxu0 %vm52_vm0, %v3490_v19  ;;  %3411 = vmatmul.mubr.msk.bf16.vlgmr.msra.gmra.mrb[8].mxu1 %vm52_vm0, %v3492_v20 }
  0x1b   :  { %3415 = vmatpush3.bf16.xpose.msra.mxu0 %v484_v21  ;;  %3421 = vmatpush3.bf16.xpose.msra.mxu1 %v541_v22 }
  0x1c   :  { %3416 = vmatprep.mubr.msk.bf16.mxu0 %vm3601_vm1, %v3600_v0  ;;  %3422 = vmatprep.mubr.msk.bf16.mxu1 %vm3601_vm1, %v3600_v0 }
  0x1d   :  { %3426 = vmatprep.subr.bf16.mxu0 %v3600_v0  ;;  %3432 = vmatprep.subr.bf16.mxu1 %v3600_v0 }
  0x22   :  { %3417 = vmatmul.mubr.msk.bf16.vlgmr.msra.gmra.mrb[12].mxu0 %vm52_vm0, %v3494_v23  ;;  %3423 = vmatmul.mubr.msk.bf16.vlgmr.msra.gmra.mrb[12].mxu1 %vm52_vm0, %v3495_v24 }
  0x23   :  { %3428 = vmatprep.mubr.msk.bf16.mxu0 %vm3601_vm1, %v3600_v0  ;;  %3434 = vmatprep.mubr.msk.bf16.mxu1 %vm3601_vm1, %v3600_v0 }
  0xdd   :  { %v178_v31 = vpop.f32.mrb[0].mxu0  ;;  %v235_v34 = vpop.f32.mrb[0].mxu1 }
  0xde   :  { %v3808_v33 = vsel %vm3798_vm3, %v178_v31, -1e+30  ;;  %v3382_v35 = vpop.f32.mrb[1].mxu0  ;;  %v3812_v36 = vsel %vm3798_vm3, %v235_v34, -1e+30  ;;  %v3388_v37 = vpop.f32.mrb[1].mxu1 }
  0xdf   :  { %v181_v38 = vpop.f32.mrb[2].mxu0  ;;  %v633_v39 = vsel %vm632_vm4, %v3808_v33, -inf  ;;  %v238_v41 = vpop.f32.mrb[2].mxu1  ;;  %v639_v42 = vsel %vm632_vm4, %v3812_v36, -inf  ;;  %v3902_v37 = vld [vmem:[#allocation2] sm:$0xff] }
  0xe0   :  { %v3818_v40 = vsel %vm3802_vm5, %v181_v38, -1e+30  ;;  %634 = vmax.xlane.f32.xlu0 %v633_v39  ;;  %v3383_v43 = vpop.f32.mrb[3].mxu0  ;;  %v3824_v44 = vsel %vm3802_vm5, %v238_v41, -1e+30  ;;  %640 = vmax.xlane.f32.xlu1 %v639_v42  ;;  %v3389_v45 = vpop.f32.mrb[3].mxu1 }
  0xe1   :  { %v636_v46 = vsel %vm632_vm4, %v3818_v40, -inf  ;;  %v642_v47 = vsel %vm632_vm4, %v3824_v44, -inf  ;;  %v3904_v38 = vld [vmem:[#allocation2 + $0x10] sm:$0xff]  ;;  %v3912_v43 = vld [vmem:[#allocation2 + $0x8] sm:$0xff] }
  0xe4   :  { %637 = vmax.xlane.f32.xlu0 %v636_v46  ;;  %643 = vmax.xlane.f32.xlu1 %v642_v47  ;;  %v3919_v46 = vld [vmem:[#allocation2 + $0x18] sm:$0xff] }
  0xe5   :  { %v292_v48 = vpop.f32.mrb[4].mxu0  ;;  %v349_v51 = vpop.f32.mrb[4].mxu1 }
  0xe6   :  { %v3832_v49 = vsel %vm3798_vm3, %v292_v48, -1e+30  ;;  %v3394_v50 = vpop.f32.mrb[5].mxu0  ;;  %v3836_v53 = vsel %vm3798_vm3, %v349_v51, -1e+30  ;;  %v3400_v54 = vpop.f32.mrb[5].mxu1 }
  0xe7   :  { %v295_v52 = vpop.f32.mrb[6].mxu0  ;;  %v645_v55 = vsel %vm632_vm4, %v3832_v49, -inf  ;;  %v352_v58 = vpop.f32.mrb[6].mxu1  ;;  %v651_v62 = vsel %vm632_vm4, %v3836_v53, -inf  ;;  %v3932_v54 = vld [vmem:[#allocation2 + $0x20] sm:$0xff] }
  0xe8   :  { %v3842_v56 = vsel %vm3802_vm5, %v295_v52, -1e+30  ;;  %v3395_v57 = vpop.f32.mrb[7].mxu0  ;;  %646 = vmax.xlane.f32.xlu0 %v645_v55  ;;  %v3848_v60 = vsel %vm3802_vm5, %v352_v58, -1e+30  ;;  %v3401_v61 = vpop.f32.mrb[7].mxu1 }
  0xe9   :  { %v648_v59 = vsel %vm632_vm4, %v3842_v56, -inf  ;;  %v654_v63 = vsel %vm632_vm4, %v3848_v60, -inf  ;;  %v3943_v58 = vld [vmem:[#allocation2 + $0x28] sm:$0xff] }
  0xea   :  { %649 = vmax.xlane.f32.xlu1 %v648_v59 }
  0xec   :  { %652 = vmax.xlane.f32.xlu0 %v651_v62 }
  0xed   :  { %v406_v1 = vpop.f32.mrb[8].mxu0  ;;  %v463_v4 = vpop.f32.mrb[8].mxu1 }
  0xee   :  { %v3856_v2 = vsel %vm3798_vm3, %v406_v1, -1e+30  ;;  %655 = vmax.xlane.f32.xlu1 %v654_v63  ;;  %v3406_v3 = vpop.f32.mrb[9].mxu0  ;;  %v3860_v6 = vsel %vm3798_vm3, %v463_v4, -1e+30  ;;  %v3412_v7 = vpop.f32.mrb[9].mxu1 }
  0xef   :  { %v409_v5 = vpop.f32.mrb[10].mxu0  ;;  %v657_v8 = vsel %vm632_vm4, %v3856_v2, -inf  ;;  %v466_v10 = vpop.f32.mrb[10].mxu1  ;;  %v663_v16 = vsel %vm632_vm4, %v3860_v6, -inf  ;;  %v3948_v63 = vld [vmem:[#allocation2 + $0x30] sm:$0xff]  ;;  %v3958_v4 = vld [vmem:[#allocation2 + $0x38] sm:$0xff] }
  0xf0   :  { %v3866_v9 = vsel %vm3802_vm5, %v409_v5, -1e+30  ;;  %v3407_v11 = vpop.f32.mrb[11].mxu0  ;;  %658 = vmax.xlane.f32.xlu0 %v657_v8  ;;  %v3872_v14 = vsel %vm3802_vm5, %v466_v10, -1e+30  ;;  %v3413_v15 = vpop.f32.mrb[11].mxu1 }
  0xf1   :  { %v660_v13 = vsel %vm632_vm4, %v3866_v9, -inf  ;;  %v666_v17 = vsel %vm632_vm4, %v3872_v14, -inf  ;;  %v3967_v11 = vld [vmem:[#allocation2 + $0x40] sm:$0xff]  ;;  %v3977_v15 = vld [vmem:[#allocation2 + $0x48] sm:$0xff] }
  0xf2   :  { %661 = vmax.xlane.f32.xlu1 %v660_v13 }
  0xf4   :  { %664 = vmax.xlane.f32.xlu0 %v663_v16 }
  0xf5   :  { %v520_v18 = vpop.f32.mrb[12].mxu0  ;;  %v577_v21 = vpop.f32.mrb[12].mxu1 }
  0xf6   :  { %v3880_v19 = vsel %vm3798_vm3, %v520_v18, -1e+30  ;;  %667 = vmax.xlane.f32.xlu1 %v666_v17  ;;  %v3418_v20 = vpop.f32.mrb[13].mxu0  ;;  %v3884_v23 = vsel %vm3798_vm3, %v577_v21, -1e+30  ;;  %v3424_v24 = vpop.f32.mrb[13].mxu1 }
  0xf7   :  { %v523_v22 = vpop.f32.mrb[14].mxu0  ;;  %v669_v25 = vsel %vm632_vm4, %v3880_v19, -inf  ;;  %v580_v27 = vpop.f32.mrb[14].mxu1  ;;  %v675_v34 = vsel %vm632_vm4, %v3884_v23, -inf  ;;  %v3986_v21 = vld [vmem:[#allocation2 + $0x50] sm:$0xff]  ;;  %v3991_v24 = vld [vmem:[#allocation2 + $0x58] sm:$0xff] }
  0xf8   :  { %v3890_v26 = vsel %vm3802_vm5, %v523_v22, -1e+30  ;;  %v3419_v28 = vpop.f32.mrb[15].mxu0  ;;  %670 = vmax.xlane.f32.xlu0 %v669_v25  ;;  %v3896_v31 = vsel %vm3802_vm5, %v580_v27, -1e+30  ;;  %v3425_v30 = vpop.f32.mrb[15].mxu1 }
  0xf9   :  { %v672_v29 = vsel %vm632_vm4, %v3890_v26, -inf  ;;  %v678_v35 = vsel %vm632_vm4, %v3896_v31, -inf  ;;  %v3496_v28 = vld [vmem:[%s4334_s2] sm:$0xff]  }
  0xfa   :  { %673 = vmax.xlane.f32.xlu1 %v672_v29  ;;  %3427 = vmatpush3.bf16.msra.mxu0 %v3496_v28  ;;  %v4044_v28 = vld [vmem:[#allocation2 + $0x78] sm:$0xff] }
  0xfb   :  { %3438 = vmatprep.subr.bf16.mxu0 %v3600_v0 }
  0xfc   :  { %676 = vmax.xlane.f32.xlu0 %v675_v34  ;;  %v4009_v34 = vld [vmem:[#allocation2 + $0x60] sm:$0xff] }
  0xfe   :  { %679 = vmax.xlane.f32.xlu1 %v678_v35 }
 0x16d   :  { %v635_v39 = vpop.xlane.xlu0 %634  ;;  %v641_v41 = vpop.xlane.xlu1 %640 }
 0x16e   :  { %v3907_v32 = vmax.f32 %v3902_v37, %v635_v39  ;;  %v3910_v42 = vmax.f32 %v3904_v38, %v641_v41  ;;  %v4014_v41 = vld [vmem:[#allocation2 + $0x68] sm:$0xff] }
 0x170   :  { %1538 = vst.msk [vmem:[#allocation2] sm:$0xff] %vm19_vm2, %v3907_v32  ;;  %747 = vperm.xlu0 %3478, %v3907_v32   ;;  %1540 = vst.msk [vmem:[#allocation2 + $0x10] sm:$0xff] %vm19_vm2, %v3910_v42  ;;  %757 = vperm.xlu1 %3479, %v3910_v42  }
 0x171   :  { %v638_v48 = vpop.xlane.xlu0 %637  ;;  %v644_v50 = vpop.xlane.xlu1 %643 }
 0x172   :  { %v3927_v51 = vmax.f32 %v3912_v43, %v638_v48  ;;  %v3930_v52 = vmax.f32 %v3919_v46, %v644_v50 }
 0x174   :  { %v698_v55 = vsub.f32 %v3912_v43, %v3927_v51  ;;  %1539 = vst.msk [vmem:[#allocation2 + $0x8] sm:$0xff] %vm19_vm2, %v3927_v51  ;;  %1541 = vst.msk [vmem:[#allocation2 + $0x18] sm:$0xff] %vm19_vm2, %v3930_v52  ;;  %752 = vperm.xlu1 %3479, %v3927_v51  }
 0x175   :  { %v647_v59 = vpop.xlane.xlu0 %646 }
 0x176   :  { %v3946_v61 = vmax.f32 %v3932_v54, %v647_v59  ;;  %v3497_v59 = vld [vmem:[%s4334_s2 + $0x8] sm:$0xff]  }
 0x177   :  { %v650_v62 = vpop.xlane.xlu1 %649  ;;  %3433 = vmatpush3.bf16.msra.mxu1 %v3497_v59 }
 0x178   :  { %v3951_v1 = vmax.f32 %v3943_v58, %v650_v62  ;;  %1542 = vst.msk [vmem:[#allocation2 + $0x20] sm:$0xff] %vm19_vm2, %v3946_v61  ;;  %762 = vperm.xlu1 %3479, %v3930_v52   ;;  %3444 = vmatprep.subr.bf16.mxu1 %v3600_v0 }
 0x179   :  { %v653_v5 = vpop.xlane.xlu0 %652 }
 0x17a   :  { %1543 = vst.msk [vmem:[#allocation2 + $0x28] sm:$0xff] %vm19_vm2, %v3951_v1  ;;  %v3965_v8 = vmax.f32 %v3948_v63, %v653_v5 }
 0x17b   :  { %v656_v10 = vpop.xlane.xlu1 %655 }
 0x17c   :  { %v3970_v12 = vmax.f32 %v3958_v4, %v656_v10  ;;  %1544 = vst.msk [vmem:[#allocation2 + $0x30] sm:$0xff] %vm19_vm2, %v3965_v8  ;;  %767 = vperm.xlu1 %3479, %v3946_v61   ;;  %v4033_v10 = vld [vmem:[#allocation2 + $0x70] sm:$0xff] }
 0x17d   :  { %v659_v16 = vpop.xlane.xlu0 %658 }
 0x17e   :  { %1545 = vst.msk [vmem:[#allocation2 + $0x38] sm:$0xff] %vm19_vm2, %v3970_v12  ;;  %v3984_v18 = vmax.f32 %v3967_v11, %v659_v16 }
 0x17f   :  { %v662_v20 = vpop.xlane.xlu1 %661 }
 0x180   :  { %v3989_v22 = vmax.f32 %v3977_v15, %v662_v20  ;;  %1546 = vst.msk [vmem:[#allocation2 + $0x40] sm:$0xff] %vm19_vm2, %v3984_v18  ;;  %777 = vperm.xlu1 %3479, %v3965_v8  }
 0x181   :  { %v665_v27 = vpop.xlane.xlu0 %664 }
 0x182   :  { %1547 = vst.msk [vmem:[#allocation2 + $0x48] sm:$0xff] %vm19_vm2, %v3989_v22  ;;  %792 = vperm.xlu0 %3478, %v3989_v22   ;;  %v4007_v30 = vmax.f32 %v3986_v21, %v665_v27 }
 0x183   :  { %v668_v35 = vpop.xlane.xlu1 %667 }
 0x184   :  { %v4012_v39 = vmax.f32 %v3991_v24, %v668_v35  ;;  %1548 = vst.msk [vmem:[#allocation2 + $0x50] sm:$0xff] %vm19_vm2, %v4007_v30  ;;  %772 = vperm.xlu1 %3479, %v3951_v1  }
 0x185   :  { %v671_v50 = vpop.xlane.xlu0 %670 }
 0x186   :  { %1549 = vst.msk [vmem:[#allocation2 + $0x58] sm:$0xff] %vm19_vm2, %v4012_v39  ;;  %802 = vperm.xlu0 %3478, %v4012_v39   ;;  %v4031_v5 = vmax.f32 %v4009_v34, %v671_v50 }
 0x187   :  { %v674_v16 = vpop.xlane.xlu1 %673 }
 0x188   :  { %v4036_v20 = vmax.f32 %v4014_v41, %v674_v16  ;;  %1550 = vst.msk [vmem:[#allocation2 + $0x60] sm:$0xff] %vm19_vm2, %v4031_v5  ;;  %782 = vperm.xlu1 %3479, %v3970_v12  }
 0x189   :  { %v677_v35 = vpop.xlane.xlu0 %676 }
 0x18a   :  { %1551 = vst.msk [vmem:[#allocation2 + $0x68] sm:$0xff] %vm19_vm2, %v4036_v20  ;;  %812 = vperm.xlu0 %3478, %v4036_v20   ;;  %v4052_v59 = vmax.f32 %v4033_v10, %v677_v35 }
 0x18b   :  { %v680_v16 = vpop.xlane.xlu1 %679 }
 0x18c   :  { %v4055_v62 = vmax.f32 %v4044_v28, %v680_v16  ;;  %1552 = vst.msk [vmem:[#allocation2 + $0x70] sm:$0xff] %vm19_vm2, %v4052_v59  ;;  %787 = vperm.xlu1 %3479, %v3984_v18  }
 0x18e   :  { %1553 = vst.msk [vmem:[#allocation2 + $0x78] sm:$0xff] %vm19_vm2, %v4055_v62  ;;  %822 = vperm.xlu0 %3478, %v4055_v62  }
 0x190   :  { %797 = vperm.xlu1 %3479, %v4007_v30  }
 0x194   :  { %807 = vperm.xlu1 %3479, %v4031_v5  }
 0x198   :  { %817 = vperm.xlu1 %3479, %v4052_v59  }
 0x1ef   :  { %v748_v35 = vpop.permute.xlu0 %747  ;;  %v758_v27 = vpop.permute.xlu1 %757 }
 0x1f0   :  { %v825_v16 = vsub.f32 %v3808_v33, %v748_v35  ;;  %v827_v29 = vsub.f32 %v3812_v36, %v758_v27 }
 0x1f2   :  { %v841_v48 = vmul.f32 1.442695, %v825_v16  ;;  %v845_v17 = vmul.f32 1.442695, %v827_v29 }
 0x1f3   :  { %v753_v50 = vpop.permute.xlu1 %752 }
 0x1f4   :  { %3504 = vpow2.f32 %v841_v48  ;;  %v826_v25 = vsub.f32 %v3818_v40, %v753_v50 }
 0x1f5   :  { %3506 = vpow2.f32 %v845_v17 }
 0x1f6   :  { %v843_v7 = vmul.f32 1.442695, %v826_v25 }
 0x1f7   :  { %v763_v13 = vpop.permute.xlu1 %762 }
 0x1f8   :  { %3508 = vpow2.f32 %v843_v7  ;;  %v828_v57 = vsub.f32 %v3824_v44, %v763_v13 }
 0x1fa   :  { %v847_v3 = vmul.f32 1.442695, %v828_v57 }
 0x1fb   :  { %v768_v45 = vpop.permute.xlu1 %767 }
 0x1fc   :  { %3510 = vpow2.f32 %v847_v3  ;;  %v829_v33 = vsub.f32 %v3832_v49, %v768_v45  ;;  %v3498_v49 = vld [vmem:[%s4334_s2 + $0x10] sm:$0xff]  }
 0x1fe   :  { %v3505_v35 = vpop.eup %3504  ;;  %v849_v36 = vmul.f32 1.442695, %v829_v33  ;;  %v3499_v33 = vld [vmem:[%s4334_s2 + $0x18] sm:$0xff]  }
 0x1ff   :  { %v3507_v47 = vpop.eup %3506  ;;  %v905_v29 = vsel %vm632_vm4, %v3505_v35, 0.0  ;;  %v778_v48 = vpop.permute.xlu1 %777 }
 0x200   :  { %906 = vadd.xlane.f32.xlu1 %v905_v29  ;;  %v911_v17 = vsel %vm632_vm4, %v3507_v47, 0.0  ;;  %3512 = vpow2.f32 %v849_v36  ;;  %v831_v40 = vsub.f32 %v3836_v53, %v778_v48 }
 0x201   :  { %912 = vadd.xlane.f32.xlu0 %v911_v17  ;;  %v793_v7 = vpop.permute.xlu0 %792 }
 0x202   :  { %v3509_v44 = vpop.eup %3508  ;;  %v853_v57 = vmul.f32 1.442695, %v831_v40  ;;  %v834_v50 = vsub.f32 %v3866_v9, %v793_v7 }
 0x203   :  { %v773_v45 = vpop.permute.xlu1 %772  ;;  %v908_v3 = vsel %vm632_vm4, %v3509_v44, 0.0  ;;  %v1098_v13 = vpack.c.bf16 %v3509_v44, %v3505_v35 }
 0x204   :  { %3514 = vpow2.f32 %v853_v57  ;;  %v830_v25 = vsub.f32 %v3842_v56, %v773_v45  ;;  %v859_v17 = vmul.f32 1.442695, %v834_v50 }
 0x205   :  { %909 = vadd.xlane.f32.xlu0 %v908_v3  ;;  %v803_v27 = vpop.permute.xlu0 %802  ;;  %3429 = vmatmul.mubr.msk.bf16.vlgmr.msra.gmra.mrb[16].mxu0 %vm632_vm4, %v1098_v13 }
 0x206   :  { %v3511_v53 = vpop.eup %3510  ;;  %v851_v16 = vmul.f32 1.442695, %v830_v25  ;;  %3439 = vmatpush3.bf16.msra.mxu0 %v3498_v49  ;;  %3440 = vmatprep.mubr.msk.bf16.mxu0 %vm3601_vm1, %v3600_v0  ;;  %v836_v40 = vsub.f32 %v3872_v14, %v803_v27 }
 0x207   :  { %v783_v35 = vpop.permute.xlu1 %782  ;;  %v914_v36 = vsel %vm632_vm4, %v3511_v53, 0.0  ;;  %v1099_v56 = vpack.c.bf16 %v3511_v53, %v3507_v47  ;;  %3450 = vmatprep.subr.bf16.mxu0 %v3600_v0 }
 0x208   :  { %3516 = vpow2.f32 %v851_v16  ;;  %v832_v29 = vsub.f32 %v3848_v60, %v783_v35  ;;  %915 = vadd.xlane.f32.xlu1 %v914_v36  ;;  %v863_v49 = vmul.f32 1.442695, %v836_v40 }
 0x209   :  { %v813_v9 = vpop.permute.xlu0 %812  ;;  %3435 = vmatmul.mubr.msk.bf16.vlgmr.msra.gmra.mrb[16].mxu1 %vm632_vm4, %v1099_v56 }
 0x20a   :  { %v3513_v48 = vpop.eup %3512  ;;  %v855_v7 = vmul.f32 1.442695, %v832_v29  ;;  %3445 = vmatpush3.bf16.msra.mxu1 %v3499_v33  ;;  %3446 = vmatprep.mubr.msk.bf16.mxu1 %vm3601_vm1, %v3600_v0  ;;  %v838_v45 = vsub.f32 %v3890_v26, %v813_v9  ;;  %v3500_v33 = vld [vmem:[%s4334_s2 + $0x20] sm:$0xff]  }
 0x20b   :  { %v788_v44 = vpop.permute.xlu1 %787  ;;  %v917_v47 = vsel %vm632_vm4, %v3513_v48, 0.0  ;;  %3456 = vmatprep.subr.bf16.mxu1 %v3600_v0 }
 0x20c   :  { %3518 = vpow2.f32 %v855_v7  ;;  %v833_v60 = vsub.f32 %v3856_v2, %v788_v44  ;;  %918 = vadd.xlane.f32.xlu0 %v917_v47  ;;  %v867_v50 = vmul.f32 1.442695, %v838_v45 }
 0x20d   :  { %3520 = vpow2.f32 %v859_v17  ;;  %v823_v3 = vpop.permute.xlu0 %822 }
 0x20e   :  { %v3515_v57 = vpop.eup %3514  ;;  %v857_v14 = vmul.f32 1.442695, %v833_v60  ;;  %v840_v2 = vsub.f32 %v3896_v31, %v823_v3  ;;  %v3501_v31 = vld [vmem:[%s4334_s2 + $0x28] sm:$0xff]   ;;  %v3502_v60 = vld [vmem:[%s4334_s2 + $0x30] sm:$0xff]   ;;  %v3503_v3 = vld [vmem:[%s4334_s2 + $0x38] sm:$0xff]  }
 0x20f   :  { %v798_v13 = vpop.permute.xlu1 %797  ;;  %v923_v25 = vsel %vm632_vm4, %v3515_v57, 0.0 }
 0x210   :  { %3522 = vpow2.f32 %v857_v14  ;;  %v835_v27 = vsub.f32 %v3860_v6, %v798_v13  ;;  %924 = vadd.xlane.f32.xlu0 %v923_v25  ;;  %v871_v29 = vmul.f32 1.442695, %v840_v2 }
 0x211   :  { %3524 = vpow2.f32 %v863_v49 }
 0x212   :  { %v3517_v53 = vpop.eup %3516  ;;  %v861_v16 = vmul.f32 1.442695, %v835_v27 }
 0x213   :  { %v808_v26 = vpop.permute.xlu1 %807  ;;  %v920_v35 = vsel %vm632_vm4, %v3517_v53, 0.0  ;;  %v1100_v36 = vpack.c.bf16 %v3517_v53, %v3513_v48 }
 0x214   :  { %3526 = vpow2.f32 %v861_v16  ;;  %v837_v56 = vsub.f32 %v3880_v19, %v808_v26  ;;  %921 = vadd.xlane.f32.xlu1 %v920_v35 }
 0x215   :  { %3441 = vmatmul.mubr.msk.bf16.vlgmr.msra.gmra.mrb[20].mxu0 %vm632_vm4, %v1100_v36  ;;  %3528 = vpow2.f32 %v867_v50 }
 0x216   :  { %v3519_v6 = vpop.eup %3518  ;;  %v865_v9 = vmul.f32 1.442695, %v837_v56  ;;  %3451 = vmatpush3.bf16.msra.mxu0 %v3500_v33  ;;  %3452 = vmatprep.mubr.msk.bf16.mxu0 %vm3601_vm1, %v3600_v0 }
 0x217   :  { %v818_v17 = vpop.permute.xlu1 %817  ;;  %v926_v48 = vsel %vm632_vm4, %v3519_v6, 0.0  ;;  %v1101_v40 = vpack.c.bf16 %v3519_v6, %v3515_v57  ;;  %3462 = vmatprep.subr.bf16.mxu0 %v3600_v0  ;;  %v3521_v19 = vpop.eup %3520 }
 0x218   :  { %3530 = vpow2.f32 %v865_v9  ;;  %v839_v7 = vsub.f32 %v3884_v23, %v818_v17  ;;  %927 = vadd.xlane.f32.xlu1 %v926_v48  ;;  %v932_v57 = vsel %vm632_vm4, %v3521_v19, 0.0  ;;  %v4342_v48 = vsub.f32 %v3932_v54, %v3946_v61 }
 0x219   :  { %3447 = vmatmul.mubr.msk.bf16.vlgmr.msra.gmra.mrb[20].mxu1 %vm632_vm4, %v1101_v40  ;;  %3532 = vpow2.f32 %v871_v29  ;;  %v4340_v29 = vsub.f32 %v3904_v38, %v3910_v42  ;;  %v4344_v38 = vsub.f32 %v3948_v63, %v3965_v8  ;;  %v4346_v54 = vsub.f32 %v3967_v11, %v3984_v18 }
 0x21a   :  { %v3523_v44 = vpop.eup %3522  ;;  %v869_v47 = vmul.f32 1.442695, %v839_v7  ;;  %3457 = vmatpush3.bf16.msra.mxu1 %v3501_v31  ;;  %3458 = vmatprep.mubr.msk.bf16.mxu1 %vm3601_vm1, %v3600_v0  ;;  %v4341_v31 = vsub.f32 %v3902_v37, %v3907_v32  ;;  %v721_v40 = vmul.f32 1.442695, %v4342_v48  ;;  %v4345_v37 = vsub.f32 %v3943_v58, %v3951_v1 }
 0x21b   :  { %v929_v49 = vsel %vm632_vm4, %v3523_v44, 0.0  ;;  %v1102_v45 = vpack.c.bf16 %v3521_v19, %v3523_v44  ;;  %3468 = vmatprep.subr.bf16.mxu1 %v3600_v0  ;;  %v3525_v23 = vpop.eup %3524  ;;  %v717_v9 = vmul.f32 1.442695, %v4340_v29  ;;  %v4343_v19 = vsub.f32 %v3919_v46, %v3930_v52 }
 0x21c   :  { %3534 = vpow2.f32 %v869_v47  ;;  %933 = vadd.xlane.f32.xlu1 %v932_v57  ;;  %930 = vadd.xlane.f32.xlu0 %v929_v49  ;;  %v938_v13 = vsel %vm632_vm4, %v3525_v23, 0.0  ;;  %v713_v17 = vmul.f32 1.442695, %v4341_v31  ;;  %v725_v42 = vmul.f32 1.442695, %v4344_v38  ;;  %v878_v38 = vld [vmem:[#allocation3 + $0x28] sm:$0xff] }
 0x21d   :  { %3453 = vmatmul.mubr.msk.bf16.vlgmr.msra.gmra.mrb[24].mxu0 %vm632_vm4, %v1102_v45  ;;  %v719_v43 = vmul.f32 1.442695, %v4343_v19  ;;  %v723_v32 = vmul.f32 1.442695, %v4345_v37  ;;  %v729_v46 = vmul.f32 1.442695, %v4346_v54  ;;  %v4347_v52 = vsub.f32 %v3958_v4, %v3970_v12 }
 0x21e   :  { %v3527_v14 = vpop.eup %3526  ;;  %3463 = vmatpush3.bf16.msra.mxu0 %v3502_v60  ;;  %3464 = vmatprep.mubr.msk.bf16.mxu0 %vm3601_vm1, %v3600_v0  ;;  %v4348_v58 = vsub.f32 %v3986_v21, %v4007_v30  ;;  %v4349_v8 = vsub.f32 %v3977_v15, %v3989_v22  ;;  %v4350_v4 = vsub.f32 %v4009_v34, %v4031_v5  ;;  %v873_v45 = vld [vmem:[#allocation3] sm:$0xff] }
 0x21f   :  { %v935_v25 = vsel %vm632_vm4, %v3527_v14, 0.0  ;;  %v1103_v27 = vpack.c.bf16 %v3525_v23, %v3527_v14  ;;  %v3529_v53 = vpop.eup %3528  ;;  %v4351_v21 = vsub.f32 %v3991_v24, %v4012_v39  ;;  %v4352_v15 = vsub.f32 %v4033_v10, %v4052_v59  ;;  %v875_v23 = vld [vmem:[#allocation3 + $0x10] sm:$0xff] }
 0x220   :  { %939 = vadd.xlane.f32.xlu1 %v938_v13  ;;  %936 = vadd.xlane.f32.xlu0 %v935_v25  ;;  %v944_v2 = vsel %vm632_vm4, %v3529_v53, 0.0  ;;  %v733_v1 = vmul.f32 1.442695, %v4348_v58  ;;  %v731_v11 = vmul.f32 1.442695, %v4349_v8  ;;  %v4353_v34 = vsub.f32 %v4014_v41, %v4036_v20  ;;  %v882_v8 = vld [vmem:[#allocation3 + $0x48] sm:$0xff] }
 0x221   :  { %3459 = vmatmul.mubr.msk.bf16.vlgmr.msra.gmra.mrb[24].mxu1 %vm632_vm4, %v1103_v27  ;;  %v737_v12 = vmul.f32 1.442695, %v4350_v4  ;;  %v735_v30 = vmul.f32 1.442695, %v4351_v21  ;;  %v741_v22 = vmul.f32 1.442695, %v4352_v15  ;;  %v4354_v39 = vsub.f32 %v4044_v28, %v4055_v62 }
 0x222   :  { %v3531_v50 = vpop.eup %3530  ;;  %3469 = vmatpush3.bf16.msra.mxu1 %v3503_v3  ;;  %3470 = vmatprep.mubr.msk.bf16.mxu1 %vm3601_vm1, %v3600_v0  ;;  %v715_v0 = vmul.f32 1.442695, %v698_v55  ;;  %v727_v55 = vmul.f32 1.442695, %v4347_v52  ;;  %v739_v5 = vmul.f32 1.442695, %v4353_v34 }
 0x223   :  { %v941_v16 = vsel %vm632_vm4, %v3531_v50, 0.0  ;;  %v1104_v33 = vpack.c.bf16 %v3529_v53, %v3531_v50  ;;  %v3533_v26 = vpop.eup %3532  ;;  %v743_v10 = vmul.f32 1.442695, %v4354_v39  ;;  %v874_v53 = vld [vmem:[#allocation3 + $0x8] sm:$0xff] }
 0x224   :  { %945 = vadd.xlane.f32.xlu1 %v944_v2  ;;  %942 = vadd.xlane.f32.xlu0 %v941_v16  ;;  %v950_v36 = vsel %vm632_vm4, %v3533_v26, 0.0  ;;  %3536 = vpow2.f32 %v715_v0 }
 0x225   :  { %3465 = vmatmul.mubr.msk.bf16.vlgmr.msra.gmra.mrb[28].mxu0 %vm632_vm4, %v1104_v33  ;;  %3538 = vpow2.f32 %v717_v9  ;;  %v876_v33 = vld [vmem:[#allocation3 + $0x18] sm:$0xff] }
 0x226   :  { %v3535_v35 = vpop.eup %3534  ;;  %3540 = vpow2.f32 %v713_v17  ;;  %v879_v17 = vld [vmem:[#allocation3 + $0x30] sm:$0xff] }
 0x227   :  { %v947_v56 = vsel %vm632_vm4, %v3535_v35, 0.0  ;;  %v1105_v6 = vpack.c.bf16 %v3533_v26, %v3535_v35  ;;  %3542 = vpow2.f32 %v721_v40 }
 0x228   :  { %951 = vadd.xlane.f32.xlu1 %v950_v36  ;;  %948 = vadd.xlane.f32.xlu0 %v947_v56  ;;  %3544 = vpow2.f32 %v719_v43  ;;  %v877_v56 = vld [vmem:[#allocation3 + $0x20] sm:$0xff] }
 0x229   :  { %3471 = vmatmul.mubr.msk.bf16.vlgmr.msra.gmra.mrb[28].mxu1 %vm632_vm4, %v1105_v6  ;;  %3546 = vpow2.f32 %v725_v42 }
 0x22a   :  { %3548 = vpow2.f32 %v723_v32 }
 0x22b   :  { %3550 = vpow2.f32 %v729_v46  ;;  %v880_v46 = vld [vmem:[#allocation3 + $0x38] sm:$0xff] }
 0x22c   :  { %3552 = vpow2.f32 %v727_v55 }
 0x22d   :  { %3554 = vpow2.f32 %v733_v1  ;;  %v881_v1 = vld [vmem:[#allocation3 + $0x40] sm:$0xff] }
 0x22e   :  { %v4165_v51 = vpop.eup %3536  ;;  %3556 = vpow2.f32 %v731_v11 }
 0x22f   :  { %v3539_v61 = vpop.eup %3538  ;;  %3558 = vpow2.f32 %v737_v12  ;;  %v890_v2 = vmul.f32 %v4165_v51, %v874_v53  ;;  %v887_v53 = vld [vmem:[#allocation3 + $0x70] sm:$0xff] }
 0x230   :  { %v3541_v63 = vpop.eup %3540  ;;  %3560 = vpow2.f32 %v735_v30  ;;  %v891_v3 = vmul.f32 %v3539_v61, %v875_v23 }
 0x231   :  { %v3543_v18 = vpop.eup %3542  ;;  %3562 = vpow2.f32 %v741_v22  ;;  %v889_v14 = vmul.f32 %v3541_v63, %v873_v45  ;;  %v886_v45 = vld [vmem:[#allocation3 + $0x68] sm:$0xff] }
 0x232   :  { %v3545_v7 = vpop.eup %3544  ;;  %3564 = vpow2.f32 %v739_v5  ;;  %v893_v29 = vmul.f32 %v3543_v18, %v877_v56 }
 0x233   :  { %v3547_v44 = vpop.eup %3546  ;;  %3566 = vpow2.f32 %v743_v10  ;;  %v892_v35 = vmul.f32 %v3545_v7, %v876_v33 }
 0x234   :  { %v4186_v47 = vpop.eup %3548  ;;  %v895_v19 = vmul.f32 %v3547_v44, %v879_v17 }
 0x235   :  { %v4195_v60 = vpop.eup %3550  ;;  %v894_v32 = vmul.f32 %v4186_v47, %v878_v38 }
 0x236   :  { %v4197_v24 = vpop.eup %3552  ;;  %v897_v4 = vmul.f32 %v4195_v60, %v881_v1 }
 0x237   :  { %v4204_v59 = vpop.eup %3554 }
 0x238   :  { %v4206_v57 = vpop.eup %3556 }
 0x239   :  { %1009 = vperm.xlu1 %3479, %v4165_v51   ;;  %v4210_v41 = vpop.eup %3558  ;;  %v898_v12 = vmul.f32 %v4206_v57, %v882_v8  ;;  %v988_v8 = vld [vmem:[#allocation4 + $0x10] sm:$0xff] }
 0x23a   :  { %v4212_v20 = vpop.eup %3560 }
 0x23b   :  { %v4216_v49 = vpop.eup %3562 }
 0x23c   :  { %v4218_v62 = vpop.eup %3564 }
 0x23d   :  { %1014 = vperm.xlu1 %3479, %v3539_v61   ;;  %v4222_v28 = vpop.eup %3566  ;;  %v896_v61 = vmul.f32 %v4197_v24, %v880_v46 }
 0x23e   :  { %1004 = vperm.xlu0 %3478, %v3541_v63  }
 0x241   :  { %1024 = vperm.xlu1 %3479, %v3543_v18  }
 0x242   :  { %1019 = vperm.xlu0 %3478, %v3545_v7  }
 0x245   :  { %1034 = vperm.xlu1 %3479, %v3547_v44   ;;  %v883_v44 = vld [vmem:[#allocation3 + $0x50] sm:$0xff] }
 0x246   :  { %1029 = vperm.xlu0 %3478, %v4186_v47   ;;  %v884_v47 = vld [vmem:[#allocation3 + $0x58] sm:$0xff] }
 0x249   :  { %1044 = vperm.xlu1 %3479, %v4195_v60   ;;  %v900_v60 = vmul.f32 %v4212_v20, %v884_v47 }
 0x24a   :  { %1039 = vperm.xlu0 %3478, %v4197_v24   ;;  %v899_v24 = vmul.f32 %v4204_v59, %v883_v44 }
 0x24d   :  { %1054 = vperm.xlu1 %3479, %v4204_v59   ;;  %v902_v59 = vmul.f32 %v4218_v62, %v886_v45 }
 0x24e   :  { %1049 = vperm.xlu0 %3478, %v4206_v57   ;;  %v885_v57 = vld [vmem:[#allocation3 + $0x60] sm:$0xff] }
 0x251   :  { %1064 = vperm.xlu1 %3479, %v4210_v41  }
 0x252   :  { %1059 = vperm.xlu0 %3478, %v4212_v20  }
 0x255   :  { %1074 = vperm.xlu1 %3479, %v4216_v49  }
 0x256   :  { %1069 = vperm.xlu0 %3478, %v4218_v62  }
 0x25a   :  { %1079 = vperm.xlu0 %3478, %v4222_v28  }
 0x28d   :  { %v907_v13 = vpop.xlane.xlu1 %906 }
 0x28e   :  { %v913_v25 = vpop.xlane.xlu0 %912  ;;  %v953_v27 = vadd.f32 %v907_v13, %v889_v14 }
 0x28f   :  { %v955_v50 = vadd.f32 %v913_v25, %v891_v3  ;;  %v901_v25 = vmul.f32 %v4210_v41, %v885_v57 }
 0x290   :  { %970 = vst.msk [vmem:[#allocation3] sm:$0xff] %vm19_vm2, %v953_v27 }
 0x291   :  { %972 = vst.msk [vmem:[#allocation3 + $0x10] sm:$0xff] %vm19_vm2, %v955_v50  ;;  %v888_v50 = vld [vmem:[#allocation3 + $0x78] sm:$0xff] }
 0x292   :  { %v910_v16 = vpop.xlane.xlu0 %909  ;;  %v904_v41 = vmul.f32 %v4222_v28, %v888_v50 }
 0x293   :  { %v954_v26 = vadd.f32 %v910_v16, %v890_v2 }
 0x295   :  { %971 = vst.msk [vmem:[#allocation3 + $0x8] sm:$0xff] %vm19_vm2, %v954_v26  ;;  %v916_v36 = vpop.xlane.xlu1 %915 }
 0x296   :  { %v956_v6 = vadd.f32 %v916_v36, %v892_v35  ;;  %v903_v36 = vmul.f32 %v4216_v49, %v887_v53 }
 0x297   :  { %v3005_v0 = vld [vmem:[#allocation3] sm:$0xff] }
 0x298   :  { %3568 = vrcp.f32 %v3005_v0  ;;  %973 = vst.msk [vmem:[#allocation3 + $0x18] sm:$0xff] %vm19_vm2, %v956_v6  ;;  %v3007_v9 = vld [vmem:[#allocation3 + $0x10] sm:$0xff] }
 0x299   :  { %v919_v31 = vpop.xlane.xlu0 %918  ;;  %3570 = vrcp.f32 %v3007_v9 }
 0x29a   :  { %v957_v48 = vadd.f32 %v919_v31, %v893_v29 }
 0x29c   :  { %v3006_v40 = vld [vmem:[#allocation3 + $0x8] sm:$0xff]  ;;  %974 = vst.msk [vmem:[#allocation3 + $0x20] sm:$0xff] %vm19_vm2, %v957_v48 }
 0x29d   :  { %3572 = vrcp.f32 %v3006_v40  ;;  %v925_v43 = vpop.xlane.xlu0 %924 }
 0x29e   :  { %v959_v42 = vadd.f32 %v925_v43, %v895_v19 }
 0x29f   :  { %v3008_v37 = vld [vmem:[#allocation3 + $0x18] sm:$0xff] }
 0x2a0   :  { %976 = vst.msk [vmem:[#allocation3 + $0x30] sm:$0xff] %vm19_vm2, %v959_v42  ;;  %3574 = vrcp.f32 %v3008_v37 }
 0x2a1   :  { %v922_v54 = vpop.xlane.xlu1 %921 }
 0x2a2   :  { %v3569_v51 = vpop.eup %3568  ;;  %v958_v52 = vadd.f32 %v922_v54, %v894_v32 }
 0x2a3   :  { %3055 = vperm.xlu1 %3479, %v3569_v51   ;;  %v3009_v55 = vld [vmem:[#allocation3 + $0x20] sm:$0xff]  ;;  %v3571_v63 = vpop.eup %3570 }
 0x2a4   :  { %975 = vst.msk [vmem:[#allocation3 + $0x28] sm:$0xff] %vm19_vm2, %v958_v52  ;;  %3576 = vrcp.f32 %v3009_v55  ;;  %v986_v55 = vld [vmem:[#allocation4] sm:$0xff] }
 0x2a5   :  { %v928_v58 = vpop.xlane.xlu1 %927 }
 0x2a6   :  { %v960_v18 = vadd.f32 %v928_v58, %v896_v61 }
 0x2a7   :  { %v3573_v11 = vpop.eup %3572  ;;  %3065 = vperm.xlu1 %3479, %v3571_v63   ;;  %v3011_v7 = vld [vmem:[#allocation3 + $0x30] sm:$0xff]  ;;  %v987_v63 = vld [vmem:[#allocation4 + $0x8] sm:$0xff] }
 0x2a8   :  { %3060 = vperm.xlu0 %3478, %v3573_v11   ;;  %977 = vst.msk [vmem:[#allocation3 + $0x38] sm:$0xff] %vm19_vm2, %v960_v18  ;;  %3578 = vrcp.f32 %v3011_v7 }
 0x2a9   :  { %v931_v21 = vpop.xlane.xlu0 %930  ;;  %v934_v30 = vpop.xlane.xlu1 %933 }
 0x2aa   :  { %v3575_v15 = vpop.eup %3574  ;;  %v961_v22 = vadd.f32 %v931_v21, %v897_v4  ;;  %v962_v34 = vadd.f32 %v934_v30, %v898_v12  ;;  %v989_v12 = vld [vmem:[#allocation4 + $0x18] sm:$0xff] }
 0x2ab   :  { %v3010_v5 = vld [vmem:[#allocation3 + $0x28] sm:$0xff] }
 0x2ac   :  { %3070 = vperm.xlu0 %3478, %v3575_v15   ;;  %978 = vst.msk [vmem:[#allocation3 + $0x40] sm:$0xff] %vm19_vm2, %v961_v22  ;;  %979 = vst.msk [vmem:[#allocation3 + $0x48] sm:$0xff] %vm19_vm2, %v962_v34  ;;  %3580 = vrcp.f32 %v3010_v5 }
 0x2ad   :  { %v937_v39 = vpop.xlane.xlu0 %936  ;;  %v940_v10 = vpop.xlane.xlu1 %939 }
 0x2ae   :  { %v3577_v23 = vpop.eup %3576  ;;  %v963_v14 = vadd.f32 %v937_v39, %v899_v24  ;;  %v964_v3 = vadd.f32 %v940_v10, %v900_v60 }
 0x2af   :  { %3075 = vperm.xlu1 %3479, %v3577_v23   ;;  %v3012_v13 = vld [vmem:[#allocation3 + $0x38] sm:$0xff] }
 0x2b0   :  { %980 = vst.msk [vmem:[#allocation3 + $0x50] sm:$0xff] %vm19_vm2, %v963_v14  ;;  %981 = vst.msk [vmem:[#allocation3 + $0x58] sm:$0xff] %vm19_vm2, %v964_v3  ;;  %3582 = vrcp.f32 %v3012_v13  ;;  %v990_v14 = vld [vmem:[#allocation4 + $0x20] sm:$0xff]  ;;  %v991_v3 = vld [vmem:[#allocation4 + $0x28] sm:$0xff] }
 0x2b1   :  { %v943_v20 = vpop.xlane.xlu0 %942  ;;  %v946_v27 = vpop.xlane.xlu1 %945 }
 0x2b2   :  { %v3579_v2 = vpop.eup %3578  ;;  %v965_v16 = vadd.f32 %v943_v20, %v901_v25  ;;  %v966_v33 = vadd.f32 %v946_v27, %v902_v59  ;;  %v992_v59 = vld [vmem:[#allocation4 + $0x30] sm:$0xff] }
 0x2b3   :  { %3085 = vperm.xlu1 %3479, %v3579_v2   ;;  %v3013_v26 = vld [vmem:[#allocation3 + $0x40] sm:$0xff]  ;;  %v3014_v35 = vld [vmem:[#allocation3 + $0x48] sm:$0xff] }
 0x2b4   :  { %982 = vst.msk [vmem:[#allocation3 + $0x60] sm:$0xff] %vm19_vm2, %v965_v16  ;;  %983 = vst.msk [vmem:[#allocation3 + $0x68] sm:$0xff] %vm19_vm2, %v966_v33  ;;  %3584 = vrcp.f32 %v3013_v26  ;;  %v993_v16 = vld [vmem:[#allocation4 + $0x38] sm:$0xff] }
 0x2b5   :  { %v949_v62 = vpop.xlane.xlu0 %948  ;;  %v952_v56 = vpop.xlane.xlu1 %951  ;;  %3586 = vrcp.f32 %v3014_v35 }
 0x2b6   :  { %v3581_v6 = vpop.eup %3580  ;;  %v967_v0 = vadd.f32 %v949_v62, %v903_v36  ;;  %v968_v29 = vadd.f32 %v952_v56, %v904_v41  ;;  %v994_v41 = vld [vmem:[#allocation4 + $0x40] sm:$0xff] }
 0x2b7   :  { %3080 = vperm.xlu0 %3478, %v3581_v6   ;;  %v3015_v9 = vld [vmem:[#allocation3 + $0x50] sm:$0xff]  ;;  %v3016_v31 = vld [vmem:[#allocation3 + $0x58] sm:$0xff] }
 0x2b8   :  { %984 = vst.msk [vmem:[#allocation3 + $0x70] sm:$0xff] %vm19_vm2, %v967_v0  ;;  %985 = vst.msk [vmem:[#allocation3 + $0x78] sm:$0xff] %vm19_vm2, %v968_v29  ;;  %3588 = vrcp.f32 %v3015_v9  ;;  %v995_v9 = vld [vmem:[#allocation4 + $0x48] sm:$0xff] }
 0x2b9   :  { %3590 = vrcp.f32 %v3016_v31  ;;  %v1010_v46 = vpop.permute.xlu1 %1009 }
 0x2ba   :  { %v3583_v17 = vpop.eup %3582  ;;  %v1083_v18 = vmul.f32 %v1010_v46, %v987_v63 }
 0x2bb   :  { %3090 = vperm.xlu0 %3478, %v3583_v17   ;;  %v3017_v49 = vld [vmem:[#allocation3 + $0x60] sm:$0xff]  ;;  %v3018_v28 = vld [vmem:[#allocation3 + $0x68] sm:$0xff] }
 0x2bc   :  { %3592 = vrcp.f32 %v3017_v49 }
 0x2bd   :  { %3594 = vrcp.f32 %v3018_v28  ;;  %v1005_v52 = vpop.permute.xlu0 %1004  ;;  %v1015_v61 = vpop.permute.xlu1 %1014 }
 0x2be   :  { %v3585_v48 = vpop.eup %3584  ;;  %v1082_v1 = vmul.f32 %v1005_v52, %v986_v55  ;;  %v1084_v44 = vmul.f32 %v1015_v61, %v988_v8  ;;  %v998_v55 = vld [vmem:[#allocation4 + $0x60] sm:$0xff] }
 0x2bf   :  { %v3587_v40 = vpop.eup %3586  ;;  %3095 = vperm.xlu1 %3479, %v3585_v48   ;;  %v3019_v19 = vld [vmem:[#allocation3 + $0x70] sm:$0xff]  ;;  %v3020_v43 = vld [vmem:[#allocation3 + $0x78] sm:$0xff] }
 0x2c0   :  { %3100 = vperm.xlu0 %3478, %v3587_v40   ;;  %3596 = vrcp.f32 %v3019_v19  ;;  %v996_v40 = vld [vmem:[#allocation4 + $0x50] sm:$0xff] }
 0x2c1   :  { %3598 = vrcp.f32 %v3020_v43  ;;  %v1020_v58 = vpop.permute.xlu0 %1019  ;;  %v1025_v21 = vpop.permute.xlu1 %1024 }
 0x2c2   :  { %v3589_v38 = vpop.eup %3588  ;;  %v1085_v5 = vmul.f32 %v1020_v58, %v989_v12  ;;  %v1086_v25 = vmul.f32 %v1025_v21, %v990_v14  ;;  %v1000_v21 = vld [vmem:[#allocation4 + $0x70] sm:$0xff] }
 0x2c3   :  { %v3591_v42 = vpop.eup %3590  ;;  %3105 = vperm.xlu1 %3479, %v3589_v38  }
 0x2c4   :  { %3110 = vperm.xlu0 %3478, %v3591_v42  }
 0x2c5   :  { %v1030_v22 = vpop.permute.xlu0 %1029  ;;  %v1035_v45 = vpop.permute.xlu1 %1034 }
 0x2c6   :  { %v3593_v37 = vpop.eup %3592  ;;  %v1087_v53 = vmul.f32 %v1030_v22, %v991_v3  ;;  %v1088_v26 = vmul.f32 %v1035_v45, %v992_v59 }
 0x2c7   :  { %v3595_v32 = vpop.eup %3594  ;;  %3115 = vperm.xlu1 %3479, %v3593_v37   ;;  %v997_v37 = vld [vmem:[#allocation4 + $0x58] sm:$0xff] }
 0x2c8   :  { %3120 = vperm.xlu0 %3478, %v3595_v32  }
 0x2c9   :  { %v1040_v23 = vpop.permute.xlu0 %1039  ;;  %v1045_v13 = vpop.permute.xlu1 %1044 }
 0x2ca   :  { %v3597_v51 = vpop.eup %3596  ;;  %v1089_v6 = vmul.f32 %v1040_v23, %v993_v16  ;;  %v1090_v49 = vmul.f32 %v1045_v13, %v994_v41 }
 0x2cb   :  { %v3599_v54 = vpop.eup %3598  ;;  %3125 = vperm.xlu1 %3479, %v3597_v51  }
 0x2cc   :  { %3130 = vperm.xlu0 %3478, %v3599_v54  }
 0x2cd   :  { %v1050_v20 = vpop.permute.xlu0 %1049  ;;  %v1055_v62 = vpop.permute.xlu1 %1054 }
 0x2ce   :  { %v1091_v43 = vmul.f32 %v1050_v20, %v995_v9  ;;  %v1092_v54 = vmul.f32 %v1055_v62, %v996_v40 }
 0x2d1   :  { %v1060_v31 = vpop.permute.xlu0 %1059  ;;  %v1065_v32 = vpop.permute.xlu1 %1064 }
 0x2d2   :  { %v1093_v58 = vmul.f32 %v1060_v31, %v997_v37 }
 0x2d5   :  { %v1070_v61 = vpop.permute.xlu0 %1069 }
 0x2d8   :  { %v1149_v11 = vpop.f32.mrb[16].mxu0 }
 0x2d9   :  { %v1506_v7 = vadd.f32 %v1149_v11, %v1082_v1  ;;  %v3430_v4 = vpop.f32.mrb[17].mxu0  ;;  %v999_v11 = vld [vmem:[#allocation4 + $0x68] sm:$0xff] }
 0x2da   :  { %v1152_v30 = vpop.f32.mrb[18].mxu0 }
 0x2db   :  { %1522 = vst.msk [vmem:[#allocation4] sm:$0xff] %vm52_vm0, %v1506_v7  ;;  %v1507_v47 = vadd.f32 %v1152_v30, %v1083_v18  ;;  %v3431_v15 = vpop.f32.mrb[19].mxu0  ;;  %v1094_v7 = vmul.f32 %v1065_v32, %v998_v55  ;;  %v1075_v30 = vpop.permute.xlu1 %1074 }
 0x2dc   :  { %v1199_v34 = vpop.f32.mrb[16].mxu1 }
 0x2dd   :  { %1523 = vst.msk [vmem:[#allocation4 + $0x8] sm:$0xff] %vm52_vm0, %v1507_v47  ;;  %v1508_v24 = vadd.f32 %v1199_v34, %v1084_v44  ;;  %v3436_v60 = vpop.f32.mrb[17].mxu1  ;;  %v1095_v47 = vmul.f32 %v1070_v61, %v999_v11  ;;  %v1001_v34 = vld [vmem:[#allocation4 + $0x78] sm:$0xff] }
 0x2de   :  { %v1202_v39 = vpop.f32.mrb[18].mxu1  ;;  %v1096_v60 = vmul.f32 %v1075_v30, %v1000_v21 }
 0x2df   :  { %1524 = vst.msk [vmem:[#allocation4 + $0x10] sm:$0xff] %vm52_vm0, %v1508_v24  ;;  %v1509_v10 = vadd.f32 %v1202_v39, %v1085_v5  ;;  %v3437_v57 = vpop.f32.mrb[19].mxu1  ;;  %v1080_v5 = vpop.permute.xlu0 %1079 }
 0x2e0   :  { %v1097_v45 = vmul.f32 %v1080_v5, %v1001_v34 }
 0x2e1   :  { %1525 = vst.msk [vmem:[#allocation4 + $0x18] sm:$0xff] %vm52_vm0, %v1509_v10 }
 0x2e2   :  { %v3037_v20 = vld [vmem:[#allocation4] sm:$0xff] }
 0x2e8   :  { %v1249_v27 = vpop.f32.mrb[20].mxu0  ;;  %v3040_v62 = vld [vmem:[#allocation4 + $0x18] sm:$0xff] }
 0x2e9   :  { %v1510_v50 = vadd.f32 %v1249_v27, %v1086_v25  ;;  %v3442_v2 = vpop.f32.mrb[21].mxu0 }
 0x2ea   :  { %v1252_v33 = vpop.f32.mrb[22].mxu0 }
 0x2eb   :  { %1526 = vst.msk [vmem:[#allocation4 + $0x20] sm:$0xff] %vm52_vm0, %v1510_v50  ;;  %v1511_v35 = vadd.f32 %v1252_v33, %v1087_v53  ;;  %v3443_v36 = vpop.f32.mrb[23].mxu0  ;;  %v3039_v50 = vld [vmem:[#allocation4 + $0x10] sm:$0xff]  ;;  %v3038_v33 = vld [vmem:[#allocation4 + $0x8] sm:$0xff] }
 0x2ec   :  { %v1299_v56 = vpop.f32.mrb[20].mxu1 }
 0x2ed   :  { %1527 = vst.msk [vmem:[#allocation4 + $0x28] sm:$0xff] %vm52_vm0, %v1511_v35  ;;  %v1512_v0 = vadd.f32 %v1299_v56, %v1088_v26  ;;  %v3448_v29 = vpop.f32.mrb[21].mxu1 }
 0x2ee   :  { %v1302_v17 = vpop.f32.mrb[22].mxu1 }
 0x2ef   :  { %1528 = vst.msk [vmem:[#allocation4 + $0x30] sm:$0xff] %vm52_vm0, %v1512_v0  ;;  %v1513_v28 = vadd.f32 %v1302_v17, %v1089_v6  ;;  %v3449_v48 = vpop.f32.mrb[23].mxu1 }
 0x2f0   :  { %v1349_v19 = vpop.f32.mrb[24].mxu0 }
 0x2f1   :  { %1529 = vst.msk [vmem:[#allocation4 + $0x38] sm:$0xff] %vm52_vm0, %v1513_v28  ;;  %v1514_v38 = vadd.f32 %v1349_v19, %v1090_v49  ;;  %v3454_v42 = vpop.f32.mrb[25].mxu0 }
 0x2f2   :  { %v1352_v51 = vpop.f32.mrb[26].mxu0  ;;  %v3041_v9 = vld [vmem:[#allocation4 + $0x20] sm:$0xff] }
 0x2f3   :  { %1530 = vst.msk [vmem:[#allocation4 + $0x40] sm:$0xff] %vm52_vm0, %v1514_v38  ;;  %v1515_v46 = vadd.f32 %v1352_v51, %v1091_v43  ;;  %v3455_v52 = vpop.f32.mrb[27].mxu0 }
 0x2f4   :  { %v1399_v63 = vpop.f32.mrb[24].mxu1  ;;  %v3042_v43 = vld [vmem:[#allocation4 + $0x28] sm:$0xff] }
 0x2f5   :  { %1531 = vst.msk [vmem:[#allocation4 + $0x48] sm:$0xff] %vm52_vm0, %v1515_v46  ;;  %v1516_v1 = vadd.f32 %v1399_v63, %v1092_v54  ;;  %v3460_v8 = vpop.f32.mrb[25].mxu1 }
 0x2f6   :  { %v1402_v18 = vpop.f32.mrb[26].mxu1  ;;  %v3043_v49 = vld [vmem:[#allocation4 + $0x30] sm:$0xff] }
 0x2f7   :  { %1532 = vst.msk [vmem:[#allocation4 + $0x50] sm:$0xff] %vm52_vm0, %v1516_v1  ;;  %v1517_v4 = vadd.f32 %v1402_v18, %v1093_v58  ;;  %v3461_v12 = vpop.f32.mrb[27].mxu1 }
 0x2f8   :  { %v1449_v44 = vpop.f32.mrb[28].mxu0  ;;  %v3044_v37 = vld [vmem:[#allocation4 + $0x38] sm:$0xff] }
 0x2f9   :  { %1533 = vst.msk [vmem:[#allocation4 + $0x58] sm:$0xff] %vm52_vm0, %v1517_v4  ;;  %v1518_v15 = vadd.f32 %v1449_v44, %v1094_v7  ;;  %v3466_v22 = vpop.f32.mrb[29].mxu0 }
 0x2fa   :  { %v1452_v24 = vpop.f32.mrb[30].mxu0  ;;  %v3045_v52 = vld [vmem:[#allocation4 + $0x40] sm:$0xff] }
 0x2fb   :  { %1534 = vst.msk [vmem:[#allocation4 + $0x60] sm:$0xff] %vm52_vm0, %v1518_v15  ;;  %v1519_v39 = vadd.f32 %v1452_v24, %v1095_v47  ;;  %v3467_v10 = vpop.f32.mrb[31].mxu0 }
 0x2fc   :  { %v1499_v57 = vpop.f32.mrb[28].mxu1  ;;  %v3046_v61 = vld [vmem:[#allocation4 + $0x48] sm:$0xff] }
 0x2fd   :  { %1535 = vst.msk [vmem:[#allocation4 + $0x68] sm:$0xff] %vm52_vm0, %v1519_v39  ;;  %v1520_v23 = vadd.f32 %v1499_v57, %v1096_v60  ;;  %v3472_v14 = vpop.f32.mrb[29].mxu1 }
 0x2fe   :  { %v1502_v3 = vpop.f32.mrb[30].mxu1  ;;  %v3047_v11 = vld [vmem:[#allocation4 + $0x50] sm:$0xff] }
 0x2ff   :  { %1536 = vst.msk [vmem:[#allocation4 + $0x70] sm:$0xff] %vm52_vm0, %v1520_v23  ;;  %v1521_v13 = vadd.f32 %v1502_v3, %v1097_v45  ;;  %v3473_v25 = vpop.f32.mrb[31].mxu1 }
 0x300   :  { %v3048_v7 = vld [vmem:[#allocation4 + $0x58] sm:$0xff] }
 0x301   :  { %1537 = vst.msk [vmem:[#allocation4 + $0x78] sm:$0xff] %vm52_vm0, %v1521_v13 }
 0x302   :  { %v3049_v15 = vld [vmem:[#allocation4 + $0x60] sm:$0xff] }
 0x304   :  { %v3050_v34 = vld [vmem:[#allocation4 + $0x68] sm:$0xff] }
 0x306   :  { %v3051_v10 = vld [vmem:[#allocation4 + $0x70] sm:$0xff] }
 0x308   :  { %v3052_v45 = vld [vmem:[#allocation4 + $0x78] sm:$0xff] }
 0x322   :  { %v3056_v59 = vpop.permute.xlu1 %3055 }
 0x323   :  { %v3133_v27 = vmul.f32 %v3056_v59, %v3037_v20 }
 0x325   :  { %v3330_v53 = vpack.c.bf16 %v3133_v27, %v3133_v27 }
 0x326   :  { %v3066_v2 = vpop.permute.xlu1 %3065 }
 0x327   :  { %3214 = vst.msk [vmem:[%s4335_s3] sm:$0xf] %vm3213_vm6, %v3330_v53  ;;  %v3061_v16 = vpop.permute.xlu0 %3060  ;;  %v3135_v26 = vmul.f32 %v3066_v2, %v3039_v50 }
 0x328   :  { %v3134_v35 = vmul.f32 %v3061_v16, %v3038_v33 }
 0x329   :  { %v3332_v36 = vpack.c.bf16 %v3135_v26, %v3135_v26 }
 0x32a   :  { %v3331_v41 = vpack.c.bf16 %v3134_v35, %v3134_v35 }
 0x32b   :  { %3216 = vst.msk [vmem:[%s4335_s3 + $0x8] sm:$0xf] %vm3213_vm6, %v3332_v36  ;;  %v3071_v56 = vpop.permute.xlu0 %3070 }
 0x32c   :  { %3215 = vst.msk [vmem:[%s4335_s3 + $0x4] sm:$0xf] %vm3213_vm6, %v3331_v41  ;;  %v3136_v6 = vmul.f32 %v3071_v56, %v3040_v62 }
 0x32e   :  { %v3333_v0 = vpack.c.bf16 %v3136_v6, %v3136_v6  ;;  %v3076_v29 = vpop.permute.xlu1 %3075 }
 0x32f   :  { %v3137_v31 = vmul.f32 %v3076_v29, %v3041_v9 }
 0x330   :  { %3217 = vst.msk [vmem:[%s4335_s3 + $0xc] sm:$0xf] %vm3213_vm6, %v3333_v0 }
 0x331   :  { %v3334_v17 = vpack.c.bf16 %v3137_v31, %v3137_v31 }
 0x332   :  { %v3086_v28 = vpop.permute.xlu1 %3085 }
 0x333   :  { %3218 = vst.msk [vmem:[%s4335_s3 + $0x10] sm:$0xf] %vm3213_vm6, %v3334_v17  ;;  %v3139_v48 = vmul.f32 %v3086_v28, %v3043_v49 }
 0x335   :  { %v3336_v40 = vpack.c.bf16 %v3139_v48, %v3139_v48 }
 0x336   :  { %v3081_v19 = vpop.permute.xlu0 %3080 }
 0x337   :  { %3220 = vst.msk [vmem:[%s4335_s3 + $0x18] sm:$0xf] %vm3213_vm6, %v3336_v40  ;;  %v3138_v38 = vmul.f32 %v3081_v19, %v3042_v43 }
 0x339   :  { %v3335_v42 = vpack.c.bf16 %v3138_v38, %v3138_v38 }
 0x33a   :  { %v3091_v32 = vpop.permute.xlu0 %3090 }
 0x33b   :  { %3219 = vst.msk [vmem:[%s4335_s3 + $0x14] sm:$0xf] %vm3213_vm6, %v3335_v42  ;;  %v3140_v51 = vmul.f32 %v3091_v32, %v3044_v37 }
 0x33d   :  { %v3337_v54 = vpack.c.bf16 %v3140_v51, %v3140_v51 }
 0x33e   :  { %v3096_v46 = vpop.permute.xlu1 %3095 }
 0x33f   :  { %3221 = vst.msk [vmem:[%s4335_s3 + $0x1c] sm:$0xf] %vm3213_vm6, %v3337_v54  ;;  %v3101_v55 = vpop.permute.xlu0 %3100  ;;  %v3141_v63 = vmul.f32 %v3096_v46, %v3045_v52 }
 0x340   :  { %v3142_v58 = vmul.f32 %v3101_v55, %v3046_v61 }
 0x341   :  { %v3338_v1 = vpack.c.bf16 %v3141_v63, %v3141_v63 }
 0x342   :  { %v3339_v8 = vpack.c.bf16 %v3142_v58, %v3142_v58  ;;  %v3106_v18 = vpop.permute.xlu1 %3105 }
 0x343   :  { %3222 = vst.msk [vmem:[%s4335_s3 + $0x20] sm:$0xf] %vm3213_vm6, %v3338_v1  ;;  %v3111_v4 = vpop.permute.xlu0 %3110  ;;  %v3143_v12 = vmul.f32 %v3106_v18, %v3047_v11 }
 0x344   :  { %3223 = vst.msk [vmem:[%s4335_s3 + $0x24] sm:$0xf] %vm3213_vm6, %v3339_v8  ;;  %v3144_v21 = vmul.f32 %v3111_v4, %v3048_v7 }
 0x345   :  { %v3340_v30 = vpack.c.bf16 %v3143_v12, %v3143_v12 }
 0x346   :  { %v3341_v44 = vpack.c.bf16 %v3144_v21, %v3144_v21  ;;  %v3116_v47 = vpop.permute.xlu1 %3115 }
 0x347   :  { %3224 = vst.msk [vmem:[%s4335_s3 + $0x28] sm:$0xf] %vm3213_vm6, %v3340_v30  ;;  %v3121_v22 = vpop.permute.xlu0 %3120  ;;  %v3145_v5 = vmul.f32 %v3116_v47, %v3049_v15 }
 0x348   :  { %3225 = vst.msk [vmem:[%s4335_s3 + $0x2c] sm:$0xf] %vm3213_vm6, %v3341_v44  ;;  %v3146_v24 = vmul.f32 %v3121_v22, %v3050_v34 }
 0x349   :  { %v3342_v60 = vpack.c.bf16 %v3145_v5, %v3145_v5 }
 0x34a   :  { %v3343_v39 = vpack.c.bf16 %v3146_v24, %v3146_v24  ;;  %v3126_v57 = vpop.permute.xlu1 %3125 }
 0x34b   :  { %3226 = vst.msk [vmem:[%s4335_s3 + $0x30] sm:$0xf] %vm3213_vm6, %v3342_v60  ;;  %v3131_v23 = vpop.permute.xlu0 %3130  ;;  %v3147_v14 = vmul.f32 %v3126_v57, %v3051_v10 }
 0x34c   :  { %3227 = vst.msk [vmem:[%s4335_s3 + $0x34] sm:$0xf] %vm3213_vm6, %v3343_v39  ;;  %v3148_v3 = vmul.f32 %v3131_v23, %v3052_v45 }
 0x34d   :  { %v3344_v13 = vpack.c.bf16 %v3147_v14, %v3147_v14 }
 0x34e   :  { %v3345_v25 = vpack.c.bf16 %v3148_v3, %v3148_v3 }
 0x34f   :  { %3228 = vst.msk [vmem:[%s4335_s3 + $0x38] sm:$0xf] %vm3213_vm6, %v3344_v13 }
 0x350   :  { %3229 = vst.msk [vmem:[%s4335_s3 + $0x3c] sm:$0xf] %vm3213_vm6, %v3345_v25 }

</bundles_post_ra>
